<compile_context>
chip_gen: v6e
topology: v6e:2x2x1
jax: 0.10.0
libtpu: 0.0.40
codegen_flags: <defaults>
</compile_context>

<pallas_src>
import functools

import jax
import jax.numpy as jnp
from jax import lax
from jax.experimental import pallas as pl
from jax.experimental.pallas import tpu as pltpu


# ----------------------------------------------------------------------------
# Fused Pallas kernel: n_layers encoder blocks + eos pick + fc head
# ----------------------------------------------------------------------------
def fused_branch_encoder_kernel(
        x_ref, ln1_g, ln1_b, wqkv, bqkv, wproj, bproj,
        ln2_g, ln2_b, w1, b1, w2, b2, fc_w, fc_b, bias_ref, sel_ref,
        out_ref, x_sc, *, n_heads):
    """One grid step == one transformer layer.

    x_ref     : (B*T, C) input embeddings (constant block, read at layer 0)
    per-layer weights are (..,) kernel views sliced from (L, ...) stacks
    bias_ref  : (B*T, B*T) block-diagonal attention bias (0 / -1e30)
    sel_ref   : (B, B*T)   eos-token (or mean) pooling matrix
    out_ref   : (B, out_dim) written only at the last layer
    x_sc      : (B*T, C) f32 VMEM scratch, resident across the whole grid
    """
    layer = pl.program_id(0)
    BT, C = x_sc.shape
    H = n_heads
    D = C // H
    eps = 1e-5

    @pl.when(layer == 0)
    def _():
        x_sc[...] = x_ref[...].astype(jnp.float32)

    x = x_sc[...]

    def layer_norm(y, g, b):
        mu = jnp.mean(y, axis=-1, keepdims=True)
        var = jnp.mean((y - mu) ** 2, axis=-1, keepdims=True)
        return (y - mu) * lax.rsqrt(var + eps) * g[...] + b[...]

    # ---- pre-norm multi-head self-attention ----
    xn = layer_norm(x, ln1_g, ln1_b)
    qkv = jnp.dot(xn, wqkv[...], preferred_element_type=jnp.float32) + bqkv[...]
    q = qkv[:, :C] * (1.0 / (D ** 0.5))       # pre-scale q (saves H VPU muls)
    k = qkv[:, C:2 * C]
    v = qkv[:, 2 * C:]

    # Head-major stacks (H, B*T, D): two batched dot_generals for all heads.
    q3 = jnp.stack([q[:, h * D:(h + 1) * D] for h in range(H)], axis=0)
    k3 = jnp.stack([k[:, h * D:(h + 1) * D] for h in range(H)], axis=0)
    v3 = jnp.stack([v[:, h * D:(h + 1) * D] for h in range(H)], axis=0)

    s = jnp.einsum('hqd,hkd->hqk', q3, k3,
                   preferred_element_type=jnp.float32)        # (H, BT, BT)
    s = s + bias_ref[...][None]                               # kill cross-batch attn
    s = s - jnp.max(s, axis=-1, keepdims=True)
    p = jnp.exp(s)
    p = p * pl.reciprocal(jnp.sum(p, axis=-1, keepdims=True), approx=True)
    o3 = jnp.einsum('hqk,hkd->hqd', p, v3,
                    preferred_element_type=jnp.float32)       # (H, BT, D)
    attn = jnp.concatenate([o3[h] for h in range(H)], axis=-1)  # (BT, C)
    attn = jnp.dot(attn, wproj[...], preferred_element_type=jnp.float32) + bproj[...]
    x = x + attn

    # ---- pre-norm GELU MLP ----
    xn = layer_norm(x, ln2_g, ln2_b)
    h1 = jax.nn.gelu(jnp.dot(xn, w1[...], preferred_element_type=jnp.float32) + b1[...])
    x = x + jnp.dot(h1, w2[...], preferred_element_type=jnp.float32) + b2[...]

    x_sc[...] = x

    # ---- fused eos-token pick + fc head on the final layer ----
    @pl.when(layer == pl.num_programs(0) - 1)
    def _():
        pooled = jnp.dot(sel_ref[...], x, preferred_element_type=jnp.float32)   # (B, C)
        out_ref[...] = (jnp.dot(pooled, fc_w[...],
                                preferred_element_type=jnp.float32)
                        + fc_b[...]).astype(out_ref.dtype)


# ----------------------------------------------------------------------------
# Wrapper
# ----------------------------------------------------------------------------
def branch_encoder_pallas(x2d, layer_w, fc_w, fc_b, attn_bias, sel, *, n_heads):
    """x2d: (B*T, C); layer_w: list of (L, ...) stacked per-layer weights."""
    BT, C = x2d.shape
    L = layer_w[0].shape[0]
    B = sel.shape[0]
    out_dim = fc_w.shape[1]

    def per_layer_spec(a):
        trailing = a.shape[1:]
        return pl.BlockSpec((None,) + trailing,
                            lambda l, _n=len(trailing): (l,) + (0,) * _n)

    def resident_spec(a):
        return pl.BlockSpec(a.shape, lambda l, _n=a.ndim: (0,) * _n)

    in_specs = ([resident_spec(x2d)]
                + [per_layer_spec(w) for w in layer_w]
                + [resident_spec(fc_w), resident_spec(fc_b),
                   resident_spec(attn_bias), resident_spec(sel)])

    return pl.pallas_call(
        functools.partial(fused_branch_encoder_kernel, n_heads=n_heads),
        out_shape=jax.ShapeDtypeStruct((B, out_dim), jnp.float32),
        grid_spec=pltpu.PrefetchScalarGridSpec(
            num_scalar_prefetch=0,
            grid=(L,),
            in_specs=in_specs,
            out_specs=pl.BlockSpec((B, out_dim), lambda l: (0, 0)),
            scratch_shapes=[pltpu.VMEM((BT, C), jnp.float32)],
        ),
        # Single sequential layer axis: activations carry across it, so it must
        # be "arbitrary".  Do not shard this tiny workload across v7x's 2 TCs.
        compiler_params=pltpu.CompilerParams(
            dimension_semantics=("arbitrary",)),
    )(x2d, *layer_w, fc_w, fc_b, attn_bias, sel)


# ----------------------------------------------------------------------------
# Parameter construction / forward glue
# ----------------------------------------------------------------------------
LAYER_WEIGHT_NAMES = ("ln1_g", "ln1_b", "wqkv", "bqkv", "wproj", "bproj",
                      "ln2_g", "ln2_b", "w1", "b1", "w2", "b2")


def get_sinusoid_encoding(n_position, d_half, pe_type):
    """Channels-last sinusoidal PE of shape (n_position, 2*d_half)."""
    pos = jnp.arange(n_position, dtype=jnp.float32)             # (T,)
    i = jnp.arange(d_half, dtype=jnp.float32)                   # (d_half,)
    denom = jnp.power(10000.0, i / jnp.maximum(d_half, 1.0))    # (d_half,)
    ang = pos[:, None] / denom[None, :]                         # (T, d_half)
    if pe_type == 0:
        pe = jnp.concatenate([jnp.sin(ang), jnp.cos(ang)], axis=1)
    else:
        pe = jnp.concatenate([jnp.cos(ang), jnp.sin(ang)], axis=1)
    return pe                                                    # (T, 2*d_half)


def init_params(key, embd_dim, out_dim, seq_len, n_layers, eos=True):
    C = embd_dim
    T = seq_len + int(eos)
    L = n_layers
    k = jax.random.split(key, 8)

    def nrm(kk, shape, std):
        return std * jax.random.normal(kk, shape, jnp.float32)

    return {
        "ke_w": nrm(k[0], (T, C), 0.01),          # nn.Embedding(seq_len+eos, C), std=0.01
        "be_w": nrm(k[1], (2, C), 0.01),          # nn.Embedding(2, C), std=0.01
        "fc_w": nrm(k[2], (C, out_dim), 0.02),    # bias zeroed per __init_weights__
        "fc_b": jnp.zeros((1, out_dim), jnp.float32),
        # per-layer weights stacked on a leading layer axis (sliced per grid step)
        "ln1_g": jnp.ones((L, 1, C), jnp.float32),
        "ln1_b": jnp.zeros((L, 1, C), jnp.float32),
        "wqkv": nrm(k[3], (L, C, 3 * C), 0.02),
        "bqkv": jnp.zeros((L, 1, 3 * C), jnp.float32),
        "wproj": nrm(k[4], (L, C, C), 0.02),
        "bproj": jnp.zeros((L, 1, C), jnp.float32),
        "ln2_g": jnp.ones((L, 1, C), jnp.float32),
        "ln2_b": jnp.zeros((L, 1, C), jnp.float32),
        "w1": nrm(k[5], (L, C, 4 * C), 0.02),
        "b1": jnp.zeros((L, 1, 4 * C), jnp.float32),
        "w2": nrm(k[6], (L, 4 * C, C), 0.02),
        "b2": jnp.zeros((L, 1, C), jnp.float32),
    }


def branch_encoder_forward(masks, params, *, embd_dim, seq_len, n_heads,
                           eos=True, pe_type=0):
    """masks: (bs, seq_len) bool -> (bs, out_dim) float32."""
    bs, t = masks.shape
    assert t == seq_len
    C = embd_dim
    T = seq_len + int(eos)

    # --- knob / branch embeddings, built channels-last directly: (bs, T, C) ---
    x = params["ke_w"].astype(jnp.float32)                    # (T, C)
    if pe_type in (0, 1):
        pe = get_sinusoid_encoding(T, C // 2, pe_type) / (C ** 0.5)
        x = x + pe
    x = jnp.broadcast_to(x[None], (bs, T, C))                 # repeat over batch
    be = params["be_w"][masks.astype(jnp.int32)]              # (bs, seq_len, C)
    if eos:
        x = jnp.concatenate([x[:, :seq_len] + be, x[:, seq_len:]], axis=1)
    else:
        x = x + be
    x2d = x.reshape(bs * T, C)                                # fold batch into rows

    # --- host-built constants consumed by the fused kernel ---
    rows = jnp.arange(bs * T) // T
    attn_bias = jnp.where(rows[:, None] == rows[None, :], 0.0, -1e30
                          ).astype(jnp.float32)               # (BT, BT) block-diag
    if eos:
        sel = jax.nn.one_hot(jnp.arange(bs) * T + (T - 1), bs * T,
                             dtype=jnp.float32)               # eos-token pick
    else:
        sel = (rows[None, :] == jnp.arange(bs)[:, None]).astype(jnp.float32) / T

    layer_w = [params[n] for n in LAYER_WEIGHT_NAMES]
    return branch_encoder_pallas(x2d, layer_w, params["fc_w"], params["fc_b"],
                                 attn_bias, sel, n_heads=n_heads)


# ----------------------------------------------------------------------------
if __name__ == "__main__":
    bs = 2
    seq_len = 8
    embd_dim = 32
    out_dim = 16
    n_heads = 4
    n_layers = 5

    key = jax.random.PRNGKey(0)
    k_param, k_mask = jax.random.split(key)
    params = init_params(k_param, embd_dim, out_dim, seq_len, n_layers, eos=True)
    masks = jax.random.bernoulli(k_mask, 0.5, (bs, seq_len))   # bool (n, kb)

    out = branch_encoder_forward(
        masks, params, embd_dim=embd_dim, seq_len=seq_len,
        n_heads=n_heads, eos=True, pe_type=0)
    out = jax.block_until_ready(out)
    assert out.shape == (bs, out_dim) and out.dtype == jnp.float32
    print("KERNEL_OK")
</pallas_src>

<mosaic_0001>
module attributes {stable_mosaic.version = 11 : i64} {
  func.func @fused_branch_encoder_kernel(%arg0: i32, %arg1: memref<18x32xf32, #tpu.memory_space<vmem>>, %arg2: memref<1x1x32xf32, #tpu.memory_space<vmem>>, %arg3: memref<1x1x32xf32, #tpu.memory_space<vmem>>, %arg4: memref<1x32x96xf32, #tpu.memory_space<vmem>>, %arg5: memref<1x1x96xf32, #tpu.memory_space<vmem>>, %arg6: memref<1x32x32xf32, #tpu.memory_space<vmem>>, %arg7: memref<1x1x32xf32, #tpu.memory_space<vmem>>, %arg8: memref<1x1x32xf32, #tpu.memory_space<vmem>>, %arg9: memref<1x1x32xf32, #tpu.memory_space<vmem>>, %arg10: memref<1x32x128xf32, #tpu.memory_space<vmem>>, %arg11: memref<1x1x128xf32, #tpu.memory_space<vmem>>, %arg12: memref<1x128x32xf32, #tpu.memory_space<vmem>>, %arg13: memref<1x1x32xf32, #tpu.memory_space<vmem>>, %arg14: memref<32x16xf32, #tpu.memory_space<vmem>>, %arg15: memref<1x16xf32, #tpu.memory_space<vmem>>, %arg16: memref<18x18xf32, #tpu.memory_space<vmem>>, %arg17: memref<2x18xf32, #tpu.memory_space<vmem>>, %arg18: memref<2x16xf32, #tpu.memory_space<vmem>>, %arg19: memref<18x32xf32, #tpu.memory_space<vmem>>) attributes {dimension_semantics = [#tpu.dimension_semantics<arbitrary>], iteration_bounds = array<i64: 5>, scalar_prefetch = 0 : i64, scratch_operands = 1 : i64, tpu.core_type = #tpu.core_type<tc>, window_params = [{pipeline_mode = #tpu.pipeline_mode<synchronous>, transform_indices = @transform_0, window_bounds = array<i64: 18, 32>}, {transform_indices = @transform_1, window_bounds = array<i64: 1, 1, 32>}, {transform_indices = @transform_2, window_bounds = array<i64: 1, 1, 32>}, {transform_indices = @transform_3, window_bounds = array<i64: 1, 32, 96>}, {transform_indices = @transform_4, window_bounds = array<i64: 1, 1, 96>}, {transform_indices = @transform_5, window_bounds = array<i64: 1, 32, 32>}, {transform_indices = @transform_6, window_bounds = array<i64: 1, 1, 32>}, {transform_indices = @transform_7, window_bounds = array<i64: 1, 1, 32>}, {transform_indices = @transform_8, window_bounds = array<i64: 1, 1, 32>}, {transform_indices = @transform_9, window_bounds = array<i64: 1, 32, 128>}, {transform_indices = @transform_10, window_bounds = array<i64: 1, 1, 128>}, {transform_indices = @transform_11, window_bounds = array<i64: 1, 128, 32>}, {transform_indices = @transform_12, window_bounds = array<i64: 1, 1, 32>}, {pipeline_mode = #tpu.pipeline_mode<synchronous>, transform_indices = @transform_13, window_bounds = array<i64: 32, 16>}, {pipeline_mode = #tpu.pipeline_mode<synchronous>, transform_indices = @transform_14, window_bounds = array<i64: 1, 16>}, {pipeline_mode = #tpu.pipeline_mode<synchronous>, transform_indices = @transform_15, window_bounds = array<i64: 18, 18>}, {pipeline_mode = #tpu.pipeline_mode<synchronous>, transform_indices = @transform_16, window_bounds = array<i64: 2, 18>}, {pipeline_mode = #tpu.pipeline_mode<synchronous>, transform_indices = @transform_17, window_bounds = array<i64: 2, 16>}]} {
    %c0_i32 = arith.constant 0 : i32
    %0 = arith.cmpi eq, %arg0, %c0_i32 : i32
    %1 = arith.extui %0 : i1 to i32
    %c0_i32_0 = arith.constant 0 : i32
    %2 = arith.cmpi ne, %1, %c0_i32_0 : i32
    scf.if %2 {
      %c0_65 = arith.constant 0 : index
      %c0_66 = arith.constant 0 : index
      %160 = vector.load %arg1[%c0_65, %c0_66] : memref<18x32xf32, #tpu.memory_space<vmem>>, vector<18x32xf32>
      %c0_67 = arith.constant 0 : index
      %c0_68 = arith.constant 0 : index
      %161 = vector.load %arg19[%c0_67, %c0_68] : memref<18x32xf32, #tpu.memory_space<vmem>>, vector<18x32xf32>
      tpu.vector_store %arg19[%c0_67, %c0_68], %160 {strides = array<i32>} : memref<18x32xf32, #tpu.memory_space<vmem>>, vector<18x32xf32>,
    } else {
    }
    %c0 = arith.constant 0 : index
    %c0_1 = arith.constant 0 : index
    %3 = vector.load %arg19[%c0, %c0_1] : memref<18x32xf32, #tpu.memory_space<vmem>>, vector<18x32xf32>
    %cst = arith.constant dense<0.000000e+00> : vector<18xf32>
    %4 = vector.multi_reduction <add>, %3, %cst [1] : vector<18x32xf32> to vector<18xf32>
    %5 = vector.shape_cast %4 : vector<18xf32> to vector<18x1xf32>
    %cst_2 = arith.constant 3.200000e+01 : f32
    %6 = vector.broadcast %cst_2 : f32 to vector<18x1xf32>
    %7 = arith.divf %5, %6 : vector<18x1xf32>
    %8 = vector.broadcast %7 : vector<18x1xf32> to vector<18x32xf32>
    %9 = arith.subf %3, %8 : vector<18x32xf32>
    %10 = arith.mulf %9, %9 : vector<18x32xf32>
    %cst_3 = arith.constant dense<0.000000e+00> : vector<18xf32>
    %11 = vector.multi_reduction <add>, %10, %cst_3 [1] : vector<18x32xf32> to vector<18xf32>
    %12 = vector.shape_cast %11 : vector<18xf32> to vector<18x1xf32>
    %cst_4 = arith.constant 3.200000e+01 : f32
    %13 = vector.broadcast %cst_4 : f32 to vector<18x1xf32>
    %14 = arith.divf %12, %13 : vector<18x1xf32>
    %15 = vector.broadcast %7 : vector<18x1xf32> to vector<18x32xf32>
    %16 = arith.subf %3, %15 : vector<18x32xf32>
    %cst_5 = arith.constant 9.99999974E-6 : f32
    %17 = vector.broadcast %cst_5 : f32 to vector<18x1xf32>
    %18 = arith.addf %14, %17 : vector<18x1xf32>
    %19 = math.rsqrt %18 : vector<18x1xf32>
    %20 = vector.broadcast %19 : vector<18x1xf32> to vector<18x32xf32>
    %21 = arith.mulf %16, %20 : vector<18x32xf32>
    %c0_6 = arith.constant 0 : index
    %c0_7 = arith.constant 0 : index
    %c0_8 = arith.constant 0 : index
    %22 = vector.load %arg2[%c0_6, %c0_7, %c0_8] : memref<1x1x32xf32, #tpu.memory_space<vmem>>, vector<1x1x32xf32>
    %23 = vector.shape_cast %22 : vector<1x1x32xf32> to vector<1x32xf32>
    %24 = vector.broadcast %23 : vector<1x32xf32> to vector<18x32xf32>
    %25 = arith.mulf %21, %24 : vector<18x32xf32>
    %c0_9 = arith.constant 0 : index
    %c0_10 = arith.constant 0 : index
    %c0_11 = arith.constant 0 : index
    %26 = vector.load %arg3[%c0_9, %c0_10, %c0_11] : memref<1x1x32xf32, #tpu.memory_space<vmem>>, vector<1x1x32xf32>
    %27 = vector.shape_cast %26 : vector<1x1x32xf32> to vector<1x32xf32>
    %28 = vector.broadcast %27 : vector<1x32xf32> to vector<18x32xf32>
    %29 = arith.addf %25, %28 : vector<18x32xf32>
    %c0_12 = arith.constant 0 : index
    %c0_13 = arith.constant 0 : index
    %c0_14 = arith.constant 0 : index
    %30 = vector.load %arg4[%c0_12, %c0_13, %c0_14] : memref<1x32x96xf32, #tpu.memory_space<vmem>>, vector<1x32x96xf32>
    %31 = vector.shape_cast %30 : vector<1x32x96xf32> to vector<32x96xf32>
    %cst_15 = arith.constant dense<0.000000e+00> : vector<18x96xf32>
    %32 = tpu.matmul %29, %31, %cst_15 {dimension_numbers = #tpu.dot_dimension_numbers<[1], [0], [0], [1], [0, 0, 1, 1], [], []>} : vector<18x32xf32>, vector<32x96xf32>, vector<18x96xf32> -> vector<18x96xf32>
    %c0_16 = arith.constant 0 : index
    %c0_17 = arith.constant 0 : index
    %c0_18 = arith.constant 0 : index
    %33 = vector.load %arg5[%c0_16, %c0_17, %c0_18] : memref<1x1x96xf32, #tpu.memory_space<vmem>>, vector<1x1x96xf32>
    %34 = vector.shape_cast %33 : vector<1x1x96xf32> to vector<1x96xf32>
    %35 = vector.broadcast %34 : vector<1x96xf32> to vector<18x96xf32>
    %36 = arith.addf %32, %35 : vector<18x96xf32>
    %37 = vector.extract_strided_slice %36 {offsets = [0, 0], sizes = [18, 32], strides = [1, 1]} : vector<18x96xf32> to vector<18x32xf32>
    %cst_19 = arith.constant 0.353553385 : f32
    %38 = vector.broadcast %cst_19 : f32 to vector<18x32xf32>
    %39 = arith.mulf %37, %38 : vector<18x32xf32>
    %40 = vector.extract_strided_slice %36 {offsets = [0, 32], sizes = [18, 32], strides = [1, 1]} : vector<18x96xf32> to vector<18x32xf32>
    %41 = vector.extract_strided_slice %36 {offsets = [0, 64], sizes = [18, 32], strides = [1, 1]} : vector<18x96xf32> to vector<18x32xf32>
    %42 = vector.extract_strided_slice %39 {offsets = [0, 0], sizes = [18, 8], strides = [1, 1]} : vector<18x32xf32> to vector<18x8xf32>
    %43 = vector.extract_strided_slice %39 {offsets = [0, 8], sizes = [18, 8], strides = [1, 1]} : vector<18x32xf32> to vector<18x8xf32>
    %44 = vector.extract_strided_slice %39 {offsets = [0, 16], sizes = [18, 8], strides = [1, 1]} : vector<18x32xf32> to vector<18x8xf32>
    %45 = vector.extract_strided_slice %39 {offsets = [0, 24], sizes = [18, 8], strides = [1, 1]} : vector<18x32xf32> to vector<18x8xf32>
    %46 = vector.shape_cast %42 : vector<18x8xf32> to vector<1x18x8xf32>
    %47 = vector.shape_cast %43 : vector<18x8xf32> to vector<1x18x8xf32>
    %48 = vector.shape_cast %44 : vector<18x8xf32> to vector<1x18x8xf32>
    %49 = vector.shape_cast %45 : vector<18x8xf32> to vector<1x18x8xf32>
    %50 = tpu.concatenate %46, %47, %48, %49 in 0 : vector<1x18x8xf32>, vector<1x18x8xf32>, vector<1x18x8xf32>, vector<1x18x8xf32> -> vector<4x18x8xf32>
    %51 = vector.extract_strided_slice %40 {offsets = [0, 0], sizes = [18, 8], strides = [1, 1]} : vector<18x32xf32> to vector<18x8xf32>
    %52 = vector.extract_strided_slice %40 {offsets = [0, 8], sizes = [18, 8], strides = [1, 1]} : vector<18x32xf32> to vector<18x8xf32>
    %53 = vector.extract_strided_slice %40 {offsets = [0, 16], sizes = [18, 8], strides = [1, 1]} : vector<18x32xf32> to vector<18x8xf32>
    %54 = vector.extract_strided_slice %40 {offsets = [0, 24], sizes = [18, 8], strides = [1, 1]} : vector<18x32xf32> to vector<18x8xf32>
    %55 = vector.shape_cast %51 : vector<18x8xf32> to vector<1x18x8xf32>
    %56 = vector.shape_cast %52 : vector<18x8xf32> to vector<1x18x8xf32>
    %57 = vector.shape_cast %53 : vector<18x8xf32> to vector<1x18x8xf32>
    %58 = vector.shape_cast %54 : vector<18x8xf32> to vector<1x18x8xf32>
    %59 = tpu.concatenate %55, %56, %57, %58 in 0 : vector<1x18x8xf32>, vector<1x18x8xf32>, vector<1x18x8xf32>, vector<1x18x8xf32> -> vector<4x18x8xf32>
    %60 = vector.extract_strided_slice %41 {offsets = [0, 0], sizes = [18, 8], strides = [1, 1]} : vector<18x32xf32> to vector<18x8xf32>
    %61 = vector.extract_strided_slice %41 {offsets = [0, 8], sizes = [18, 8], strides = [1, 1]} : vector<18x32xf32> to vector<18x8xf32>
    %62 = vector.extract_strided_slice %41 {offsets = [0, 16], sizes = [18, 8], strides = [1, 1]} : vector<18x32xf32> to vector<18x8xf32>
    %63 = vector.extract_strided_slice %41 {offsets = [0, 24], sizes = [18, 8], strides = [1, 1]} : vector<18x32xf32> to vector<18x8xf32>
    %64 = vector.shape_cast %60 : vector<18x8xf32> to vector<1x18x8xf32>
    %65 = vector.shape_cast %61 : vector<18x8xf32> to vector<1x18x8xf32>
    %66 = vector.shape_cast %62 : vector<18x8xf32> to vector<1x18x8xf32>
    %67 = vector.shape_cast %63 : vector<18x8xf32> to vector<1x18x8xf32>
    %68 = tpu.concatenate %64, %65, %66, %67 in 0 : vector<1x18x8xf32>, vector<1x18x8xf32>, vector<1x18x8xf32>, vector<1x18x8xf32> -> vector<4x18x8xf32>
    "tpu.trace_start"() <{level = 10 : i32, message = "hqd,hkd->hqk"}> : () -> ()
    %cst_20 = arith.constant dense<0.000000e+00> : vector<4x18x18xf32>
    %69 = tpu.matmul %50, %59, %cst_20 {dimension_numbers = #tpu.dot_dimension_numbers<[2], [2], [1], [1], [0, 0, 0, 1, 1, 1], [0], [0]>} : vector<4x18x8xf32>, vector<4x18x8xf32>, vector<4x18x18xf32> -> vector<4x18x18xf32>
    "tpu.trace_stop"() : () -> ()
    %c0_21 = arith.constant 0 : index
    %c0_22 = arith.constant 0 : index
    %70 = vector.load %arg16[%c0_21, %c0_22] : memref<18x18xf32, #tpu.memory_space<vmem>>, vector<18x18xf32>
    %71 = vector.shape_cast %70 : vector<18x18xf32> to vector<1x18x18xf32>
    %72 = vector.broadcast %71 : vector<1x18x18xf32> to vector<4x18x18xf32>
    %73 = arith.addf %69, %72 : vector<4x18x18xf32>
    %cst_23 = arith.constant dense<0xFF800000> : vector<4x18xf32>
    %74 = vector.multi_reduction <maximumf>, %73, %cst_23 [2] : vector<4x18x18xf32> to vector<4x18xf32>
    %75 = vector.shape_cast %74 : vector<4x18xf32> to vector<4x18x1xf32>
    %76 = vector.broadcast %75 : vector<4x18x1xf32> to vector<4x18x18xf32>
    %77 = arith.subf %73, %76 : vector<4x18x18xf32>
    %78 = math.exp %77 : vector<4x18x18xf32>
    %cst_24 = arith.constant dense<0.000000e+00> : vector<4x18xf32>
    %79 = vector.multi_reduction <add>, %78, %cst_24 [2] : vector<4x18x18xf32> to vector<4x18xf32>
    %80 = vector.shape_cast %79 : vector<4x18xf32> to vector<4x18x1xf32>
    %81 = tpu.reciprocal %80 {approx = true} : vector<4x18x1xf32> -> vector<4x18x1xf32>
    %82 = vector.broadcast %81 : vector<4x18x1xf32> to vector<4x18x18xf32>
    %83 = arith.mulf %78, %82 : vector<4x18x18xf32>
    "tpu.trace_start"() <{level = 10 : i32, message = "hqk,hkd->hqd"}> : () -> ()
    %cst_25 = arith.constant dense<0.000000e+00> : vector<4x18x8xf32>
    %84 = tpu.matmul %83, %68, %cst_25 {dimension_numbers = #tpu.dot_dimension_numbers<[2], [1], [1], [2], [0, 0, 0, 1, 1, 2], [0], [0]>} : vector<4x18x18xf32>, vector<4x18x8xf32>, vector<4x18x8xf32> -> vector<4x18x8xf32>
    "tpu.trace_stop"() : () -> ()
    %85 = vector.extract_strided_slice %84 {offsets = [0, 0, 0], sizes = [1, 18, 8], strides = [1, 1, 1]} : vector<4x18x8xf32> to vector<1x18x8xf32>
    %86 = vector.shape_cast %85 : vector<1x18x8xf32> to vector<18x8xf32>
    %87 = vector.extract_strided_slice %84 {offsets = [1, 0, 0], sizes = [1, 18, 8], strides = [1, 1, 1]} : vector<4x18x8xf32> to vector<1x18x8xf32>
    %88 = vector.shape_cast %87 : vector<1x18x8xf32> to vector<18x8xf32>
    %89 = vector.extract_strided_slice %84 {offsets = [2, 0, 0], sizes = [1, 18, 8], strides = [1, 1, 1]} : vector<4x18x8xf32> to vector<1x18x8xf32>
    %90 = vector.shape_cast %89 : vector<1x18x8xf32> to vector<18x8xf32>
    %91 = vector.extract_strided_slice %84 {offsets = [3, 0, 0], sizes = [1, 18, 8], strides = [1, 1, 1]} : vector<4x18x8xf32> to vector<1x18x8xf32>
    %92 = vector.shape_cast %91 : vector<1x18x8xf32> to vector<18x8xf32>
    %93 = tpu.concatenate %86, %88, %90, %92 in 1 : vector<18x8xf32>, vector<18x8xf32>, vector<18x8xf32>, vector<18x8xf32> -> vector<18x32xf32>
    %c0_26 = arith.constant 0 : index
    %c0_27 = arith.constant 0 : index
    %c0_28 = arith.constant 0 : index
    %94 = vector.load %arg6[%c0_26, %c0_27, %c0_28] : memref<1x32x32xf32, #tpu.memory_space<vmem>>, vector<1x32x32xf32>
    %95 = vector.shape_cast %94 : vector<1x32x32xf32> to vector<32x32xf32>
    %cst_29 = arith.constant dense<0.000000e+00> : vector<18x32xf32>
    %96 = tpu.matmul %93, %95, %cst_29 {dimension_numbers = #tpu.dot_dimension_numbers<[1], [0], [0], [1], [0, 0, 1, 1], [], []>} : vector<18x32xf32>, vector<32x32xf32>, vector<18x32xf32> -> vector<18x32xf32>
    %c0_30 = arith.constant 0 : index
    %c0_31 = arith.constant 0 : index
    %c0_32 = arith.constant 0 : index
    %97 = vector.load %arg7[%c0_30, %c0_31, %c0_32] : memref<1x1x32xf32, #tpu.memory_space<vmem>>, vector<1x1x32xf32>
    %98 = vector.shape_cast %97 : vector<1x1x32xf32> to vector<1x32xf32>
    %99 = vector.broadcast %98 : vector<1x32xf32> to vector<18x32xf32>
    %100 = arith.addf %96, %99 : vector<18x32xf32>
    %101 = arith.addf %3, %100 : vector<18x32xf32>
    %cst_33 = arith.constant dense<0.000000e+00> : vector<18xf32>
    %102 = vector.multi_reduction <add>, %101, %cst_33 [1] : vector<18x32xf32> to vector<18xf32>
    %103 = vector.shape_cast %102 : vector<18xf32> to vector<18x1xf32>
    %cst_34 = arith.constant 3.200000e+01 : f32
    %104 = vector.broadcast %cst_34 : f32 to vector<18x1xf32>
    %105 = arith.divf %103, %104 : vector<18x1xf32>
    %106 = vector.broadcast %105 : vector<18x1xf32> to vector<18x32xf32>
    %107 = arith.subf %101, %106 : vector<18x32xf32>
    %108 = arith.mulf %107, %107 : vector<18x32xf32>
    %cst_35 = arith.constant dense<0.000000e+00> : vector<18xf32>
    %109 = vector.multi_reduction <add>, %108, %cst_35 [1] : vector<18x32xf32> to vector<18xf32>
    %110 = vector.shape_cast %109 : vector<18xf32> to vector<18x1xf32>
    %cst_36 = arith.constant 3.200000e+01 : f32
    %111 = vector.broadcast %cst_36 : f32 to vector<18x1xf32>
    %112 = arith.divf %110, %111 : vector<18x1xf32>
    %113 = vector.broadcast %105 : vector<18x1xf32> to vector<18x32xf32>
    %114 = arith.subf %101, %113 : vector<18x32xf32>
    %cst_37 = arith.constant 9.99999974E-6 : f32
    %115 = vector.broadcast %cst_37 : f32 to vector<18x1xf32>
    %116 = arith.addf %112, %115 : vector<18x1xf32>
    %117 = math.rsqrt %116 : vector<18x1xf32>
    %118 = vector.broadcast %117 : vector<18x1xf32> to vector<18x32xf32>
    %119 = arith.mulf %114, %118 : vector<18x32xf32>
    %c0_38 = arith.constant 0 : index
    %c0_39 = arith.constant 0 : index
    %c0_40 = arith.constant 0 : index
    %120 = vector.load %arg8[%c0_38, %c0_39, %c0_40] : memref<1x1x32xf32, #tpu.memory_space<vmem>>, vector<1x1x32xf32>
    %121 = vector.shape_cast %120 : vector<1x1x32xf32> to vector<1x32xf32>
    %122 = vector.broadcast %121 : vector<1x32xf32> to vector<18x32xf32>
    %123 = arith.mulf %119, %122 : vector<18x32xf32>
    %c0_41 = arith.constant 0 : index
    %c0_42 = arith.constant 0 : index
    %c0_43 = arith.constant 0 : index
    %124 = vector.load %arg9[%c0_41, %c0_42, %c0_43] : memref<1x1x32xf32, #tpu.memory_space<vmem>>, vector<1x1x32xf32>
    %125 = vector.shape_cast %124 : vector<1x1x32xf32> to vector<1x32xf32>
    %126 = vector.broadcast %125 : vector<1x32xf32> to vector<18x32xf32>
    %127 = arith.addf %123, %126 : vector<18x32xf32>
    %c0_44 = arith.constant 0 : index
    %c0_45 = arith.constant 0 : index
    %c0_46 = arith.constant 0 : index
    %128 = vector.load %arg10[%c0_44, %c0_45, %c0_46] : memref<1x32x128xf32, #tpu.memory_space<vmem>>, vector<1x32x128xf32>
    %129 = vector.shape_cast %128 : vector<1x32x128xf32> to vector<32x128xf32>
    %cst_47 = arith.constant dense<0.000000e+00> : vector<18x128xf32>
    %130 = tpu.matmul %127, %129, %cst_47 {dimension_numbers = #tpu.dot_dimension_numbers<[1], [0], [0], [1], [0, 0, 1, 1], [], []>} : vector<18x32xf32>, vector<32x128xf32>, vector<18x128xf32> -> vector<18x128xf32>
    %c0_48 = arith.constant 0 : index
    %c0_49 = arith.constant 0 : index
    %c0_50 = arith.constant 0 : index
    %131 = vector.load %arg11[%c0_48, %c0_49, %c0_50] : memref<1x1x128xf32, #tpu.memory_space<vmem>>, vector<1x1x128xf32>
    %132 = vector.shape_cast %131 : vector<1x1x128xf32> to vector<1x128xf32>
    %133 = vector.broadcast %132 : vector<1x128xf32> to vector<18x128xf32>
    %134 = arith.addf %130, %133 : vector<18x128xf32>
    %135 = arith.mulf %134, %134 : vector<18x128xf32>
    %136 = arith.mulf %134, %135 : vector<18x128xf32>
    %cst_51 = arith.constant 4.471500e-02 : f32
    %137 = vector.broadcast %cst_51 : f32 to vector<18x128xf32>
    %138 = arith.mulf %137, %136 : vector<18x128xf32>
    %139 = arith.addf %134, %138 : vector<18x128xf32>
    %cst_52 = arith.constant 0.797884583 : f32
    %140 = vector.broadcast %cst_52 : f32 to vector<18x128xf32>
    %141 = arith.mulf %140, %139 : vector<18x128xf32>
    %142 = math.tanh %141 : vector<18x128xf32>
    %cst_53 = arith.constant 1.000000e+00 : f32
    %143 = vector.broadcast %cst_53 : f32 to vector<18x128xf32>
    %144 = arith.addf %143, %142 : vector<18x128xf32>
    %cst_54 = arith.constant 5.000000e-01 : f32
    %145 = vector.broadcast %cst_54 : f32 to vector<18x128xf32>
    %146 = arith.mulf %145, %144 : vector<18x128xf32>
    %147 = arith.mulf %134, %146 : vector<18x128xf32>
    %c0_55 = arith.constant 0 : index
    %c0_56 = arith.constant 0 : index
    %c0_57 = arith.constant 0 : index
    %148 = vector.load %arg12[%c0_55, %c0_56, %c0_57] : memref<1x128x32xf32, #tpu.memory_space<vmem>>, vector<1x128x32xf32>
    %149 = vector.shape_cast %148 : vector<1x128x32xf32> to vector<128x32xf32>
    %cst_58 = arith.constant dense<0.000000e+00> : vector<18x32xf32>
    %150 = tpu.matmul %147, %149, %cst_58 {dimension_numbers = #tpu.dot_dimension_numbers<[1], [0], [0], [1], [0, 0, 1, 1], [], []>} : vector<18x128xf32>, vector<128x32xf32>, vector<18x32xf32> -> vector<18x32xf32>
    %151 = arith.addf %101, %150 : vector<18x32xf32>
    %c0_59 = arith.constant 0 : index
    %c0_60 = arith.constant 0 : index
    %c0_61 = arith.constant 0 : index
    %152 = vector.load %arg13[%c0_59, %c0_60, %c0_61] : memref<1x1x32xf32, #tpu.memory_space<vmem>>, vector<1x1x32xf32>
    %153 = vector.shape_cast %152 : vector<1x1x32xf32> to vector<1x32xf32>
    %154 = vector.broadcast %153 : vector<1x32xf32> to vector<18x32xf32>
    %155 = arith.addf %151, %154 : vector<18x32xf32>
    %c0_62 = arith.constant 0 : index
    %c0_63 = arith.constant 0 : index
    %156 = vector.load %arg19[%c0_62, %c0_63] : memref<18x32xf32, #tpu.memory_space<vmem>>, vector<18x32xf32>
    tpu.vector_store %arg19[%c0_62, %c0_63], %155 {strides = array<i32>} : memref<18x32xf32, #tpu.memory_space<vmem>>, vector<18x32xf32>,
    %c4_i32 = arith.constant 4 : i32
    %157 = arith.cmpi eq, %arg0, %c4_i32 : i32
    %158 = arith.extui %157 : i1 to i32
    %c0_i32_64 = arith.constant 0 : i32
    %159 = arith.cmpi ne, %158, %c0_i32_64 : i32
    scf.if %159 {
      %c0_65 = arith.constant 0 : index
      %c0_66 = arith.constant 0 : index
      %160 = vector.load %arg17[%c0_65, %c0_66] : memref<2x18xf32, #tpu.memory_space<vmem>>, vector<2x18xf32>
      %cst_67 = arith.constant dense<0.000000e+00> : vector<2x32xf32>
      %161 = tpu.matmul %160, %155, %cst_67 {dimension_numbers = #tpu.dot_dimension_numbers<[1], [0], [0], [1], [0, 0, 1, 1], [], []>} : vector<2x18xf32>, vector<18x32xf32>, vector<2x32xf32> -> vector<2x32xf32>
      %c0_68 = arith.constant 0 : index
      %c0_69 = arith.constant 0 : index
      %162 = vector.load %arg14[%c0_68, %c0_69] : memref<32x16xf32, #tpu.memory_space<vmem>>, vector<32x16xf32>
      %cst_70 = arith.constant dense<0.000000e+00> : vector<2x16xf32>
      %163 = tpu.matmul %161, %162, %cst_70 {dimension_numbers = #tpu.dot_dimension_numbers<[1], [0], [0], [1], [0, 0, 1, 1], [], []>} : vector<2x32xf32>, vector<32x16xf32>, vector<2x16xf32> -> vector<2x16xf32>
      %c0_71 = arith.constant 0 : index
      %c0_72 = arith.constant 0 : index
      %164 = vector.load %arg15[%c0_71, %c0_72] : memref<1x16xf32, #tpu.memory_space<vmem>>, vector<1x16xf32>
      %165 = vector.broadcast %164 : vector<1x16xf32> to vector<2x16xf32>
      %166 = arith.addf %163, %165 : vector<2x16xf32>
      %c0_73 = arith.constant 0 : index
      %c0_74 = arith.constant 0 : index
      %167 = vector.load %arg18[%c0_73, %c0_74] : memref<2x16xf32, #tpu.memory_space<vmem>>, vector<2x16xf32>
      tpu.vector_store %arg18[%c0_73, %c0_74], %166 {strides = array<i32>} : memref<2x16xf32, #tpu.memory_space<vmem>>, vector<2x16xf32>,
    } else {
    }
    return
  }
  func.func @transform_0(%arg0: i32) -> (i32, i32) {
    %c0_i32 = arith.constant 0 : i32
    %c0_i32_0 = arith.constant 0 : i32
    %c0_i32_1 = arith.constant 0 : i32
    return %c0_i32, %c0_i32_0 : i32, i32
  }
  func.func @transform_1(%arg0: i32) -> (i32, i32, i32) {
    %c0_i32 = arith.constant 0 : i32
    %c0_i32_0 = arith.constant 0 : i32
    %c0_i32_1 = arith.constant 0 : i32
    return %arg0, %c0_i32, %c0_i32_0 : i32, i32, i32
  }
  func.func @transform_2(%arg0: i32) -> (i32, i32, i32) {
    %c0_i32 = arith.constant 0 : i32
    %c0_i32_0 = arith.constant 0 : i32
    %c0_i32_1 = arith.constant 0 : i32
    return %arg0, %c0_i32, %c0_i32_0 : i32, i32, i32
  }
  func.func @transform_3(%arg0: i32) -> (i32, i32, i32) {
    %c0_i32 = arith.constant 0 : i32
    %c0_i32_0 = arith.constant 0 : i32
    %c0_i32_1 = arith.constant 0 : i32
    return %arg0, %c0_i32, %c0_i32_0 : i32, i32, i32
  }
  func.func @transform_4(%arg0: i32) -> (i32, i32, i32) {
    %c0_i32 = arith.constant 0 : i32
    %c0_i32_0 = arith.constant 0 : i32
    %c0_i32_1 = arith.constant 0 : i32
    return %arg0, %c0_i32, %c0_i32_0 : i32, i32, i32
  }
  func.func @transform_5(%arg0: i32) -> (i32, i32, i32) {
    %c0_i32 = arith.constant 0 : i32
    %c0_i32_0 = arith.constant 0 : i32
    %c0_i32_1 = arith.constant 0 : i32
    return %arg0, %c0_i32, %c0_i32_0 : i32, i32, i32
  }
  func.func @transform_6(%arg0: i32) -> (i32, i32, i32) {
    %c0_i32 = arith.constant 0 : i32
    %c0_i32_0 = arith.constant 0 : i32
    %c0_i32_1 = arith.constant 0 : i32
    return %arg0, %c0_i32, %c0_i32_0 : i32, i32, i32
  }
  func.func @transform_7(%arg0: i32) -> (i32, i32, i32) {
    %c0_i32 = arith.constant 0 : i32
    %c0_i32_0 = arith.constant 0 : i32
    %c0_i32_1 = arith.constant 0 : i32
    return %arg0, %c0_i32, %c0_i32_0 : i32, i32, i32
  }
  func.func @transform_8(%arg0: i32) -> (i32, i32, i32) {
    %c0_i32 = arith.constant 0 : i32
    %c0_i32_0 = arith.constant 0 : i32
    %c0_i32_1 = arith.constant 0 : i32
    return %arg0, %c0_i32, %c0_i32_0 : i32, i32, i32
  }
  func.func @transform_9(%arg0: i32) -> (i32, i32, i32) {
    %c0_i32 = arith.constant 0 : i32
    %c0_i32_0 = arith.constant 0 : i32
    %c0_i32_1 = arith.constant 0 : i32
    return %arg0, %c0_i32, %c0_i32_0 : i32, i32, i32
  }
  func.func @transform_10(%arg0: i32) -> (i32, i32, i32) {
    %c0_i32 = arith.constant 0 : i32
    %c0_i32_0 = arith.constant 0 : i32
    %c0_i32_1 = arith.constant 0 : i32
    return %arg0, %c0_i32, %c0_i32_0 : i32, i32, i32
  }
  func.func @transform_11(%arg0: i32) -> (i32, i32, i32) {
    %c0_i32 = arith.constant 0 : i32
    %c0_i32_0 = arith.constant 0 : i32
    %c0_i32_1 = arith.constant 0 : i32
    return %arg0, %c0_i32, %c0_i32_0 : i32, i32, i32
  }
  func.func @transform_12(%arg0: i32) -> (i32, i32, i32) {
    %c0_i32 = arith.constant 0 : i32
    %c0_i32_0 = arith.constant 0 : i32
    %c0_i32_1 = arith.constant 0 : i32
    return %arg0, %c0_i32, %c0_i32_0 : i32, i32, i32
  }
  func.func @transform_13(%arg0: i32) -> (i32, i32) {
    %c0_i32 = arith.constant 0 : i32
    %c0_i32_0 = arith.constant 0 : i32
    %c0_i32_1 = arith.constant 0 : i32
    return %c0_i32, %c0_i32_0 : i32, i32
  }
  func.func @transform_14(%arg0: i32) -> (i32, i32) {
    %c0_i32 = arith.constant 0 : i32
    %c0_i32_0 = arith.constant 0 : i32
    %c0_i32_1 = arith.constant 0 : i32
    return %c0_i32, %c0_i32_0 : i32, i32
  }
  func.func @transform_15(%arg0: i32) -> (i32, i32) {
    %c0_i32 = arith.constant 0 : i32
    %c0_i32_0 = arith.constant 0 : i32
    %c0_i32_1 = arith.constant 0 : i32
    return %c0_i32, %c0_i32_0 : i32, i32
  }
  func.func @transform_16(%arg0: i32) -> (i32, i32) {
    %c0_i32 = arith.constant 0 : i32
    %c0_i32_0 = arith.constant 0 : i32
    %c0_i32_1 = arith.constant 0 : i32
    return %c0_i32, %c0_i32_0 : i32, i32
  }
  func.func @transform_17(%arg0: i32) -> (i32, i32) {
    %c0_i32 = arith.constant 0 : i32
    %c0_i32_0 = arith.constant 0 : i32
    %c0_i32_1 = arith.constant 0 : i32
    return %c0_i32, %c0_i32_0 : i32, i32
  }
}

</mosaic_0001>

<bundles_post_ra>
// kernel: tpu_custom_call.1
= control target key start
LH: loop header
LB: loop body
LE: loop exit
PB: predicated region body
PF: predicated region fallthrough
CT: control target
= control target key end

     0   :  { %s3890_s0 = inlined_call_operand.vmem [shape: f32[18,32], index: 0, kind: input, shape index: {}]   ;;  %s3891_s1 = inlined_call_operand.vmem [shape: f32[5,1,32], index: 1, kind: input, shape index: {}]   ;;  %s3892_s2 = inlined_call_operand.vmem [shape: f32[5,1,32], index: 2, kind: input, shape index: {}]   ;;  %s3893_s3 = inlined_call_operand.vmem [shape: f32[5,32,96], index: 3, kind: input, shape index: {}]   ;;  %s3894_s4 = inlined_call_operand.vmem [shape: f32[5,1,96], index: 4, kind: input, shape index: {}]   ;;  %s3895_s5 = inlined_call_operand.vmem [shape: f32[5,32,32], index: 5, kind: input, shape index: {}]   ;;  %s3896_s6 = inlined_call_operand.vmem [shape: f32[5,1,32], index: 6, kind: input, shape index: {}]   ;;  %s3897_s7 = inlined_call_operand.vmem [shape: f32[5,1,32], index: 7, kind: input, shape index: {}]   ;;  %s3898_s8 = inlined_call_operand.vmem [shape: f32[5,1,32], index: 8, kind: input, shape index: {}]   ;;  %s3899_s9 = inlined_call_operand.vmem [shape: f32[5,32,128], index: 9, kind: input, shape index: {}]   ;;  %s3900_s10 = inlined_call_operand.vmem [shape: f32[5,1,128], index: 10, kind: input, shape index: {}]   ;;  %s3901_s11 = inlined_call_operand.vmem [shape: f32[5,128,32], index: 11, kind: input, shape index: {}]   ;;  %s3902_s12 = inlined_call_operand.vmem [shape: f32[5,1,32], index: 12, kind: input, shape index: {}]   ;;  %s3903_s13 = inlined_call_operand.vmem [shape: f32[32,16], index: 13, kind: input, shape index: {}]   ;;  %s3904_s14 = inlined_call_operand.vmem [shape: f32[1,16], index: 14, kind: input, shape index: {}]   ;;  %s3905_s15 = inlined_call_operand.vmem [shape: f32[18,18], index: 15, kind: input, shape index: {}]   ;;  %s3906_s16 = inlined_call_operand.vmem [shape: f32[2,18], index: 16, kind: input, shape index: {}]   ;;  %s3907_s17 = inlined_call_operand.hbm [shape: f32[2,16], index: 17, kind: output, shape index: {}]  }
   0x1   :  { %3911 = sst [smem:[#allocation7_spill]] %s3890_s0 }
   0x2   :  { %3912 = sst [smem:[#allocation8_spill]] %s3891_s1 }
   0x3   :  { %3913 = sst [smem:[#allocation9_spill]] %s3893_s3 }
   0x4   :  { %3914 = sst [smem:[#allocation10_spill]] %s3895_s5 }
   0x5   :  { %3915 = sst [smem:[#allocation11_spill]] %s3903_s13 }
   0x6   :  { %3916 = sst [smem:[#allocation12_spill]] %s3904_s14 }
   0x7   :  { %3917 = sst [smem:[#allocation13_spill]] %s3906_s16 }
   0x8   :  { %3918 = sst [smem:[#allocation14_spill]] %s3907_s17 }
   0x9   :  { %22 = vsyncpa [#allocation4], 0  ;;  %s3272_s24 = smov 0  }
   0xa LB: > { %3919 = sst [smem:[#allocation6_spill]] %s3167_s24  ;;  %s3278_s25 = sadd.s32 4294967295, %s3167_s24   ;;  %s3167_s24 = sphi %s3272_s24, %s28_s24  }
   0xb   : > { %p2628_p0 = scmp.ge.s32.totalorder %s3167_s24, 1  ;;  %p577_p1 = scmp.lt.s32.totalorder %s3167_s24, 6 }
   0xd   : > { %p578_p2 = pnand %p2628_p0, %p577_p1 }
   0xe   : > { %p663_p3 = scmp.lt.s32.totalorder (!%p578_p2), %s3278_s25, 4  ;;  %s3921_s3 = sld [smem:[#allocation9_spill]] (!%p578_p2) }
   0xf   : > { %581 = sbr.rel (%p578_p2) target bundleno = 3070 (0xbfe), region = 88  ;;  %s3922_s5 = sld [smem:[#allocation10_spill]] (!%p578_p2) }
  0x10   : > { %p2637_p4 = scmp.ne.s32.totalorder (!%p578_p2), %s3278_s25, 0 }
  0x14   : > { %s3284_s26 = scalar_select %p663_p3, %s3278_s25, 4 }
  0x15   : > { %s3923_s23 = sld [smem:[#allocation7_spill]] (!%p2637_p4) }
  0x16   : > { %s2704_s1 = sshll.u32 %s3284_s26, 5  ;;  %s687_s16 = scalar_lea.vmem %s3897_s7, %s3284_s26 }
  0x17   : > { %s3302_s28 = scalar_lea.vmem %s3921_s3, %s2704_s1  ;;  %s3307_s14 = scalar_lea.vmem %s3922_s5, %s2704_s1 }
  0x18   : > { %s690_s22 = scalar_lea.vmem %s3898_s8, %s3284_s26  ;;  %s3324_s3 = scalar_lea.vmem %s3899_s9, %s2704_s1 }
  0x19   : > { %s698_s5 = scalar_lea.vmem %s3900_s10, %s3284_s26  ;;  %s2707_s13 = sshll.u32 %s3284_s26, 7 }
  0x1a   : > { %s3334_s30 = scalar_lea.vmem %s3901_s11, %s2707_s13  ;;  %s706_s20 = scalar_lea.vmem %s3902_s12, %s3284_s26 }
  0x1b   : > { %710 = sbr.rel (%p2637_p4) target bundleno = 35 (0x23), region = 92 }
  0x20   : > { %v711_v0 = vld [vmem:[%s3923_s23] sm:$0xff]  ;;  %vm714_vm0 = vcmask 261120   ;;  %v712_v1 = vld [vmem:[%s3923_s23 + $0x8] sm:$0xff]  ;;  %v713_v2 = vld [vmem:[%s3923_s23 + $0x10] sm:$0x3]  ;;  %vm717_vm1 = vcmask 254976  }
  0x21   : > { %715 = vst.msk [vmem:[#allocation2] sm:$0xff] %vm714_vm0, %v711_v0  ;;  %716 = vst.msk [vmem:[#allocation2 + $0x8] sm:$0xff] %vm714_vm0, %v712_v1 }
  0x22   : > { %718 = vst.msk [vmem:[#allocation2 + $0x10] sm:$0x3] %vm717_vm1, %v713_v2 }
  0x23 PF: > { %vm722_vm2 = vcmask 261120   ;;  %vm729_vm3 = vcmask 254976   ;;  %v787_v24 = vld [vmem:[%s3302_s28 + $0x18] sm:$0xff]  ;;  %v3169_v25 = vmov 0.0   ;;  %v786_v26 = vld [vmem:[%s3302_s28 + $0x10] sm:$0xff]  ;;  %vm3170_vm4 = vmmov 0   ;;  %s3926_s1 = scalar_lea.vmem %s3892_s2, %s3284_s26  ;;  %s3927_s24 = scalar_lea.vmem %s3894_s4, %s3284_s26 }
  0x24   : > { %2805 = vmatprep.subr.mxu0 %v3169_v25  ;;  %2813 = vmatprep.mubr.msk.f32.mxu0 %vm3170_vm4, %v3169_v25  ;;  %v785_v27 = vld [vmem:[%s3302_s28 + $0x8] sm:$0xff]  ;;  %v784_v28 = vld [vmem:[%s3302_s28] sm:$0xff]  ;;  %s3924_s29 = sld [smem:[#allocation8_spill]]  ;;  %s3171_s0 = smov 120   ;;  %vm938_vm5 = vcmask 64512   ;;  %vm1476_vm6 = vcmask 1041408  }
  0x25   : > { %2806 = vmatpush3.msra.mxu0 %v787_v24  ;;  %2852 = vmatprep.subr.mxu1 %v3169_v25  ;;  %v2639_v41 = vld [vmem:[%s3926_s1] ss:$0 sm:$0xff]  ;;  %s3172_s13 = smov 112   ;;  %s3173_s28 = smov 104   ;;  %vm1325_vm7 = vcmask 146432   ;;  %vm1332_vm8 = vcmask 140288  }
  0x26   : > { %2807 = vmatprep.subr.mxu0 %v3169_v25  ;;  %2858 = vmatprep.mubr.msk.f32.mxu1 %vm3170_vm4, %v3169_v25  ;;  %v2640_v54 = vld [vmem:[%s3927_s24] ss:$0 sm:$0xff]  ;;  %vm1895_vm9 = vcmask 130048   ;;  %vm1899_vm10 = vcmask 195584   ;;  %p2695_p5 = scmp.ne.s32.totalorder %s3278_s25, 4 }
  0x27   : > { %2808 = vmatpush3.msra.mxu0 %v786_v26  ;;  %s3929_s27 = sld [smem:[#allocation11_spill]] (!%p2695_p5) }
  0x28   : > { %v719_v3 = vld [vmem:[#allocation2] sm:$0xff]  ;;  %v720_v5 = vld [vmem:[#allocation2 + $0x8] sm:$0xff]  ;;  %2809 = vmatprep.subr.mxu0 %v3169_v25  ;;  %s3931_s1 = sld [smem:[#allocation12_spill]] (!%p2695_p5) }
  0x29   : > { %v721_v4 = vld [vmem:[#allocation2 + $0x10] sm:$0x3]  ;;  %v723_v6 = vsel %vm722_vm2, %v719_v3, 0.0  ;;  %v726_v8 = vsel %vm722_vm2, %v720_v5, 0.0  ;;  %2810 = vmatpush3.msra.mxu0 %v785_v27 }
  0x2a   : > { %v730_v7 = vsel %vm729_vm3, %v721_v4, 0.0  ;;  %724 = vadd.xlane.f32.xlu0 %v723_v6  ;;  %2811 = vmatprep.subr.mxu0 %v3169_v25  ;;  %s3925_s19 = scalar_lea.vmem %s3924_s29, %s3284_s26  ;;  %s3174_s29 = smov 96  }
  0x2b   : > { %731 = vadd.xlane.f32.xlu1 %v730_v7  ;;  %2812 = vmatpush3.msra.mxu0 %v784_v28  ;;  %v2638_v39 = vld [vmem:[%s3925_s19] ss:$0 sm:$0xff]  ;;  %s3175_s19 = smov 64  }
  0x2c   : > { %2822 = vmatprep.subr.mxu0 %v3169_v25 }
  0x2e   : > { %727 = vadd.xlane.f32.xlu0 %v726_v8 }
  0xb3   : > { %v725_v9 = vpop.xlane.xlu0 %724 }
  0xb4   : > { %v732_v10 = vpop.xlane.xlu1 %731  ;;  %v734_v11 = vmul.f32 0.03125, %v725_v9 }
  0xb5   : > { %v736_v12 = vmul.f32 0.03125, %v732_v10 }
  0xb6   : > { %v737_v13 = vsub.f32 %v719_v3, %v734_v11 }
  0xb7   : > { %v739_v14 = vsub.f32 %v721_v4, %v736_v12  ;;  %v728_v15 = vpop.xlane.xlu0 %727 }
  0xb8   : > { %v735_v16 = vmul.f32 0.03125, %v728_v15  ;;  %v740_v17 = vmul.f32 %v737_v13, %v737_v13 }
  0xb9   : > { %v742_v18 = vmul.f32 %v739_v14, %v739_v14 }
  0xba   : > { %v738_v19 = vsub.f32 %v720_v5, %v735_v16  ;;  %v743_v20 = vsel %vm722_vm2, %v740_v17, 0.0 }
  0xbb   : > { %744 = vadd.xlane.f32.xlu1 %v743_v20  ;;  %v749_v21 = vsel %vm729_vm3, %v742_v18, 0.0 }
  0xbc   : > { %v741_v22 = vmul.f32 %v738_v19, %v738_v19 }
  0xbe   : > { %v746_v23 = vsel %vm722_vm2, %v741_v22, 0.0 }
  0xbf   : > { %750 = vadd.xlane.f32.xlu1 %v749_v21  ;;  %747 = vadd.xlane.f32.xlu0 %v746_v23 }
 0x144   : > { %v745_v29 = vpop.xlane.xlu1 %744 }
 0x145   : > { %v752_v30 = vmul.f32 0.03125, %v745_v29 }
 0x147   : > { %v755_v31 = vadd.f32 1e-05, %v752_v30 }
 0x148   : > { %v751_v32 = vpop.xlane.xlu1 %750  ;;  %v748_v33 = vpop.xlane.xlu0 %747 }
 0x149   : > { %3064 = vrsqrt.f32 %v755_v31  ;;  %v754_v34 = vmul.f32 0.03125, %v751_v32  ;;  %v753_v35 = vmul.f32 0.03125, %v748_v33 }
 0x14b   : > { %v757_v36 = vadd.f32 1e-05, %v754_v34  ;;  %v756_v37 = vadd.f32 1e-05, %v753_v35 }
 0x14d   : > { %3066 = vrsqrt.f32 %v757_v36  ;;  %v929_v36 = vld [vmem:[%s3905_s15] sm:$0xff] }
 0x14e   : > { %3068 = vrsqrt.f32 %v756_v37 }
 0x156   : > { %v3065_v38 = vpop.eup %3064 }
 0x157   : > { %v761_v40 = vmul.f32 %v3065_v38, %v737_v13 }
 0x159   : > { %v771_v42 = vmul.f32 %v2638_v39, %v761_v40  ;;  %v930_v40 = vld [vmem:[%s3905_s15 + $0x8] sm:$0xff] }
 0x15a   : > { %v3067_v43 = vpop.eup %3066 }
 0x15b   : > { %v3069_v44 = vpop.eup %3068  ;;  %v781_v45 = vadd.f32 %v2639_v41, %v771_v42  ;;  %v763_v47 = vmul.f32 %v3067_v43, %v739_v14 }
 0x15c   : > { %v762_v46 = vmul.f32 %v3069_v44, %v738_v19 }
 0x15d   : > { %2814 = vmatmul.mubr.msk.f32.vlgmr.msra.gmra.mxu0 %vm722_vm2, %v781_v45  ;;  %v773_v50 = vmul.f32 %v2638_v39, %v763_v47  ;;  %v931_v45 = vld [vmem:[%s3905_s15 + $0x10] sm:$0x3] }
 0x15e   : > { %2816 = vmatprep.mubr.msk.f32.mxu0 %vm3170_vm4, %v3169_v25  ;;  %v772_v48 = vmul.f32 %v2638_v39, %v762_v46 }
 0x15f   : > { %v783_v51 = vadd.f32 %v2639_v41, %v773_v50 }
 0x160   : > { %v782_v49 = vadd.f32 %v2639_v41, %v772_v48 }
 0x162   : > { %2817 = vmatmul.mubr.msk.f32.gmra.mxu0 %vm722_vm2, %v782_v49 }
 0x163   : > { %2819 = vmatprep.mubr.msk.f32.mxu0 %vm3170_vm4, %v3169_v25 }
 0x166   : > { %2820 = vmatmul.mubr.msk.f32.gmra.mxu0 %vm722_vm2, %v783_v51 }
 0x167   : > { %2828 = vmatprep.mubr.msk.f32.mxu0 %vm3170_vm4, %v3169_v25 }
 0x21d   : > { %v870_v52 = vpop.f32.mrf.mxu0 }
 0x21e   : > { %v3398_v59 = vadd.f32 %v2640_v54, %v870_v52 }
 0x21f   : > { %v2815_v53 = vpop.f32.mrf.mxu0 }
 0x220   : > { %v884_v63 = vmul.f32 0.35355338, %v3398_v59 }
 0x222   : > { %v875_v55 = vpop.f32.mrf.mxu0 }
 0x223   : > { %v3394_v56 = vadd.f32 %v2640_v54, %v875_v55 }
 0x224   : > { %v2818_v57 = vpop.f32.mrf.mxu0 }
 0x225   : > { %913 = vrot.lane.b32.xlu1 %v3394_v56, %s3171_s0  ;;  %v885_v4 = vmul.f32 0.35355338, %v3394_v56 }
 0x226   : > { %v880_v58 = vpop.f32.mrf.mxu0 }
 0x227   : > { %v881_v60 = vadd.f32 %v2640_v54, %v880_v58 }
 0x228   : > { %v2821_v61 = vpop.f32.mrf.mxu0 }
 0x229   : > { %911 = vrot.lane.b32.xlu1 %v3398_v59, %s3171_s0  ;;  %915 = vrot.lane.b32.xlu0 %v881_v60, %s3171_s0  ;;  %v886_v10 = vmul.f32 0.35355338, %v881_v60 }
 0x22d   : > { %921 = vrot.lane.b32.xlu1 %v881_v60, %s3172_s13  ;;  %927 = vrot.lane.b32.xlu0 %v881_v60, %s3173_s28 }
 0x231   : > { %919 = vrot.lane.b32.xlu1 %v3394_v56, %s3172_s13  ;;  %925 = vrot.lane.b32.xlu0 %v3394_v56, %s3173_s28 }
 0x235   : > { %917 = vrot.lane.b32.xlu1 %v3398_v59, %s3172_s13  ;;  %923 = vrot.lane.b32.xlu0 %v3398_v59, %s3173_s28 }
 0x239   : > { %936 = vrot.lane.b32.xlu1 %v881_v60, %s3174_s29  ;;  %934 = vrot.lane.b32.xlu0 %v3394_v56, %s3174_s29 }
 0x23d   : > { %932 = vrot.lane.b32.xlu1 %v3398_v59, %s3174_s29 }
 0x297   : > { %v914_v62 = vpop.permute.xlu1 %913 }
 0x298   : > { %1033 = vrot.lane.b32.xlu1 %v914_v62, %s3174_s29 }
 0x29b   : > { %v3420_v0 = vpop.permute.xlu1 %911  ;;  %v916_v1 = vpop.permute.xlu0 %915 }
 0x29c   : > { %890 = vrot.lane.b32.xlu1 %v884_v63, %s3171_s0  ;;  %1035 = vrot.lane.b32.xlu0 %v916_v1, %s3174_s29 }
 0x29f   : > { %v3424_v2 = vpop.permute.xlu1 %921  ;;  %v3426_v3 = vpop.permute.xlu0 %927 }
 0x2a0   : > { %1031 = vrot.lane.b32.xlu0 %v3420_v0, %s3174_s29 }
 0x2a3   : > { %v3431_v5 = vpop.permute.xlu1 %919  ;;  %v3433_v6 = vpop.permute.xlu0 %925 }
 0x2a4   : > { %1131 = vrot.lane.b32.xlu1 %v3431_v5, %s3174_s29  ;;  %892 = vrot.lane.b32.xlu0 %v885_v4, %s3171_s0 }
 0x2a7   : > { %v3438_v7 = vpop.permute.xlu1 %917  ;;  %v3444_v8 = vpop.permute.xlu0 %923 }
 0x2a8   : > { %1133 = vrot.lane.b32.xlu0 %v3424_v2, %s3174_s29  ;;  %1231 = vrot.lane.b32.xlu1 %v3426_v3, %s3174_s29 }
 0x2ab   : > { %v937_v9 = vpop.permute.xlu1 %936  ;;  %v935_v11 = vpop.permute.xlu0 %934 }
 0x2ac   : > { %2823 = vmatpush3.xpose.msk.msra.mxu0 %vm938_vm5, %v937_v9  ;;  %1229 = vrot.lane.b32.xlu0 %v3433_v6, %s3174_s29 }
 0x2ad   : > { %894 = vrot.lane.b32.xlu1 %v886_v10, %s3171_s0  ;;  %2824 = vmatprep.subr.mxu0 %v3169_v25  ;;  %s3176_s0 = smov 8  }
 0x2af   : > { %v933_v12 = vpop.permute.xlu1 %932 }
 0x2b0   : > { %1129 = vrot.lane.b32.xlu0 %v3438_v7, %s3174_s29  ;;  %2825 = vmatpush3.xpose.msk.msra.mxu0 %vm938_vm5, %v935_v11 }
 0x2b1   : > { %1227 = vrot.lane.b32.xlu1 %v3444_v8, %s3174_s29  ;;  %2826 = vmatprep.subr.mxu0 %v3169_v25 }
 0x2b4   : > { %896 = vrot.lane.b32.xlu0 %v884_v63, %s3172_s13  ;;  %2827 = vmatpush3.xpose.msk.msra.mxu0 %vm938_vm5, %v933_v12 }
 0x2b5   : > { %902 = vrot.lane.b32.xlu1 %v884_v63, %s3173_s28  ;;  %2837 = vmatprep.subr.mxu0 %v3169_v25 }
 0x2b7   : > { %2829 = vmatmul.mubr.msk.f32.vlgmr.msra.gmra.mxu0 %vm938_vm5, %v884_v63 }
 0x2b8   : > { %898 = vrot.lane.b32.xlu0 %v885_v4, %s3172_s13  ;;  %2831 = vmatprep.mubr.msk.f32.mxu0 %vm3170_vm4, %v3169_v25 }
 0x2b9   : > { %904 = vrot.lane.b32.xlu1 %v885_v4, %s3173_s28 }
 0x2bb   : > { %2832 = vmatmul.mubr.msk.f32.gmra.mxu0 %vm938_vm5, %v885_v4 }
 0x2bc   : > { %900 = vrot.lane.b32.xlu0 %v886_v10, %s3172_s13  ;;  %2834 = vmatprep.mubr.msk.f32.mxu0 %vm3170_vm4, %v3169_v25  ;;  %s3177_s13 = smov 16  }
 0x2bd   : > { %906 = vrot.lane.b32.xlu1 %v886_v10, %s3173_s28  ;;  %s3178_s28 = smov 24  }
 0x2bf   : > { %2835 = vmatmul.mubr.msk.f32.gmra.mxu0 %vm938_vm5, %v886_v10 }
 0x2c0   : > { %1463 = vrot.lane.b32.xlu0 %v881_v60, %s3175_s19  ;;  %2843 = vmatprep.mubr.msk.f32.mxu0 %vm3170_vm4, %v3169_v25 }
 0x2c1   : > { %1461 = vrot.lane.b32.xlu1 %v3394_v56, %s3175_s19 }
 0x2c5   : > { %1561 = vrot.lane.b32.xlu1 %v914_v62, %s3175_s19 }
 0x2c9   : > { %1563 = vrot.lane.b32.xlu1 %v916_v1, %s3175_s19 }
 0x30a   : > { %v1034_v13 = vpop.permute.xlu1 %1033 }
 0x30e   : > { %v1036_v14 = vpop.permute.xlu0 %1035  ;;  %v891_v15 = vpop.permute.xlu1 %890 }
 0x30f   : > { %2838 = vmatpush3.xpose.msk.msra.mxu0 %vm938_vm5, %v1036_v14 }
 0x310   : > { %2839 = vmatprep.subr.mxu0 %v3169_v25 }
 0x312   : > { %v1032_v16 = vpop.permute.xlu0 %1031 }
 0x313   : > { %2840 = vmatpush3.xpose.msk.msra.mxu0 %vm938_vm5, %v1034_v13 }
 0x314   : > { %2841 = vmatprep.subr.mxu0 %v3169_v25 }
 0x316   : > { %v1132_v17 = vpop.permute.xlu1 %1131  ;;  %v893_v18 = vpop.permute.xlu0 %892 }
 0x317   : > { %2842 = vmatpush3.xpose.msk.msra.mxu0 %vm938_vm5, %v1032_v16 }
 0x318   : > { %2867 = vmatprep.subr.mxu0 %v3169_v25 }
 0x31a   : > { %v1232_v19 = vpop.permute.xlu1 %1231  ;;  %v1134_v20 = vpop.permute.xlu0 %1133  ;;  %2844 = vmatmul.mubr.msk.f32.vlgmr.msra.gmra.mxu0 %vm938_vm5, %v891_v15 }
 0x31b   : > { %2853 = vmatpush3.xpose.msk.msra.mxu1 %vm938_vm5, %v1134_v20  ;;  %2868 = vmatpush3.xpose.msk.msra.mxu0 %vm938_vm5, %v1232_v19 }
 0x31c   : > { %2846 = vmatprep.mubr.msk.f32.mxu0 %vm3170_vm4, %v3169_v25  ;;  %2854 = vmatprep.subr.mxu1 %v3169_v25 }
 0x31d   : > { %2869 = vmatprep.subr.mxu0 %v3169_v25 }
 0x31e   : > { %v1230_v21 = vpop.permute.xlu0 %1229  ;;  %2847 = vmatmul.mubr.msk.f32.gmra.mxu0 %vm938_vm5, %v893_v18 }
 0x31f   : > { %v895_v22 = vpop.permute.xlu1 %894  ;;  %2855 = vmatpush3.xpose.msk.msra.mxu1 %vm938_vm5, %v1132_v17  ;;  %2870 = vmatpush3.xpose.msk.msra.mxu0 %vm938_vm5, %v1230_v21 }
 0x320   : > { %2849 = vmatprep.mubr.msk.f32.mxu0 %vm3170_vm4, %v3169_v25  ;;  %2856 = vmatprep.subr.mxu1 %v3169_v25 }
 0x321   : > { %2871 = vmatprep.subr.mxu0 %v3169_v25 }
 0x322   : > { %v1130_v23 = vpop.permute.xlu0 %1129  ;;  %2850 = vmatmul.mubr.msk.f32.gmra.mxu0 %vm938_vm5, %v895_v22 }
 0x323   : > { %v1228_v24 = vpop.permute.xlu1 %1227  ;;  %2857 = vmatpush3.xpose.msk.msra.mxu1 %vm938_vm5, %v1130_v23  ;;  %2873 = vmatprep.mubr.msk.f32.mxu0 %vm3170_vm4, %v3169_v25 }
 0x324   : > { %2872 = vmatpush3.xpose.msk.msra.mxu0 %vm938_vm5, %v1228_v24  ;;  %2882 = vmatprep.subr.mxu1 %v3169_v25 }
 0x325   : > { %2897 = vmatprep.subr.mxu0 %v3169_v25 }
 0x326   : > { %v897_v26 = vpop.permute.xlu0 %896 }
 0x327   : > { %v903_v27 = vpop.permute.xlu1 %902  ;;  %2859 = vmatmul.mubr.msk.f32.vlgmr.msra.gmra.mxu1 %vm938_vm5, %v897_v26 }
 0x328   : > { %2874 = vmatmul.mubr.msk.f32.vlgmr.msra.gmra.mxu0 %vm938_vm5, %v903_v27  ;;  %2861 = vmatprep.mubr.msk.f32.mxu1 %vm3170_vm4, %v3169_v25 }
 0x329   : > { %2876 = vmatprep.mubr.msk.f32.mxu0 %vm3170_vm4, %v3169_v25 }
 0x32a   : > { %v899_v28 = vpop.permute.xlu0 %898 }
 0x32b   : > { %v905_v29 = vpop.permute.xlu1 %904  ;;  %2862 = vmatmul.mubr.msk.f32.gmra.mxu1 %vm938_vm5, %v899_v28 }
 0x32c   : > { %2877 = vmatmul.mubr.msk.f32.gmra.mxu0 %vm938_vm5, %v905_v29  ;;  %2864 = vmatprep.mubr.msk.f32.mxu1 %vm3170_vm4, %v3169_v25 }
 0x32d   : > { %2879 = vmatprep.mubr.msk.f32.mxu0 %vm3170_vm4, %v3169_v25 }
 0x32e   : > { %v901_v30 = vpop.permute.xlu0 %900 }
 0x32f   : > { %v907_v31 = vpop.permute.xlu1 %906  ;;  %2865 = vmatmul.mubr.msk.f32.gmra.mxu1 %vm938_vm5, %v901_v30 }
 0x330   : > { %2880 = vmatmul.mubr.msk.f32.gmra.mxu0 %vm938_vm5, %v907_v31  ;;  %2888 = vmatprep.mubr.msk.f32.mxu1 %vm3170_vm4, %v3169_v25 }
 0x331   : > { %2903 = vmatprep.mubr.msk.f32.mxu0 %vm3170_vm4, %v3169_v25 }
 0x332   : > { %v1464_v32 = vpop.permute.xlu0 %1463 }
 0x333   : > { %v1462_v33 = vpop.permute.xlu1 %1461  ;;  %2883 = vmatpush3.msk.msra.mxu1 %vm1476_vm6, %v1464_v32 }
 0x334   : > { %2884 = vmatprep.subr.mxu1 %v3169_v25 }
 0x335   : > { %2885 = vmatpush3.msra.mxu1 %v1462_v33 }
 0x336   : > { %2886 = vmatprep.subr.mxu1 %v3169_v25 }
 0x337   : > { %v1562_v34 = vpop.permute.xlu1 %1561 }
 0x33b   : > { %v1564_v35 = vpop.permute.xlu1 %1563 }
 0x33c   : > { %2898 = vmatpush3.msk.msra.mxu0 %vm1476_vm6, %v1564_v35 }
 0x33d   : > { %2899 = vmatprep.subr.mxu0 %v3169_v25 }
 0x33e   : > { %2900 = vmatpush3.msra.mxu0 %v1562_v34 }
 0x33f   : > { %2901 = vmatprep.subr.mxu0 %v3169_v25 }
 0x377   : > { %v1017_v37 = vpop.f32.mrf.mxu0 }
 0x378   : > { %v3533_v38 = vadd.f32 %v1017_v37, %v929_v36 }
 0x379   : > { %v2830_v39 = vpop.f32.mrf.mxu0 }
 0x37a   : > { %v1326_v41 = vsel %vm1325_vm7, %v3533_v38, -inf }
 0x37b   : > { %1327 = vmax.xlane.f32.xlu0 %v1326_v41  ;;  %v1022_v42 = vpop.f32.mrf.mxu0 }
 0x37c   : > { %v3540_v43 = vadd.f32 %v1022_v42, %v930_v40 }
 0x37d   : > { %v2833_v44 = vpop.f32.mrf.mxu0 }
 0x37e   : > { %v1329_v46 = vsel %vm1325_vm7, %v3540_v43, -inf }
 0x37f   : > { %1330 = vmax.xlane.f32.xlu0 %v1329_v46  ;;  %v1027_v47 = vpop.f32.mrf.mxu0 }
 0x380   : > { %v3547_v48 = vadd.f32 %v1027_v47, %v931_v45 }
 0x381   : > { %v2836_v49 = vpop.f32.mrf.mxu0 }
 0x382   : > { %v1333_v50 = vsel %vm1332_vm8, %v3547_v48, -inf }
 0x383   : > { %1334 = vmax.xlane.f32.xlu0 %v1333_v50 }
 0x3da   : > { %v1115_v51 = vpop.f32.mrf.mxu0 }
 0x3db   : > { %v3551_v52 = vadd.f32 %v1115_v51, %v929_v36 }
 0x3dc   : > { %v2845_v53 = vpop.f32.mrf.mxu0 }
 0x3dd   : > { %v1336_v54 = vsel %vm1325_vm7, %v3551_v52, -inf }
 0x3de   : > { %1337 = vmax.xlane.f32.xlu1 %v1336_v54  ;;  %v1120_v55 = vpop.f32.mrf.mxu0 }
 0x3df   : > { %v3557_v1 = vadd.f32 %v1120_v55, %v930_v40 }
 0x3e0   : > { %v2848_v56 = vpop.f32.mrf.mxu0 }
 0x3e1   : > { %v1339_v14 = vsel %vm1325_vm7, %v3557_v1, -inf }
 0x3e2   : > { %v1125_v57 = vpop.f32.mrf.mxu0 }
 0x3e3   : > { %v3567_v19 = vadd.f32 %v1125_v57, %v931_v45 }
 0x3e4   : > { %v2851_v58 = vpop.f32.mrf.mxu0 }
 0x3e5   : > { %v1342_v20 = vsel %vm1332_vm8, %v3567_v19, -inf }
 0x3e7   : > { %v1213_v60 = vpop.f32.mrf.mxu1 }
 0x3e8   : > { %v3555_v61 = vadd.f32 %v1213_v60, %v929_v36  ;;  %v1311_v62 = vpop.f32.mrf.mxu0 }
 0x3e9   : > { %v2860_v63 = vpop.f32.mrf.mxu1  ;;  %v3585_v24 = vadd.f32 %v1311_v62, %v929_v36 }
 0x3ea   : > { %v2875_v4 = vpop.f32.mrf.mxu0  ;;  %v1345_v9 = vsel %vm1325_vm7, %v3555_v61, -inf }
 0x3eb   : > { %v1218_v10 = vpop.f32.mrf.mxu1  ;;  %1346 = vmax.xlane.f32.xlu0 %v1345_v9  ;;  %v1354_v28 = vsel %vm1325_vm7, %v3585_v24, -inf }
 0x3ec   : > { %v1316_v11 = vpop.f32.mrf.mxu0  ;;  %v3571_v21 = vadd.f32 %v1218_v10, %v930_v40 }
 0x3ed   : > { %v2863_v12 = vpop.f32.mrf.mxu1  ;;  %v3587_v26 = vadd.f32 %v1316_v11, %v930_v40 }
 0x3ee   : > { %v2878_v13 = vpop.f32.mrf.mxu0 }
 0x3ef   : > { %v1223_v15 = vpop.f32.mrf.mxu1  ;;  %1559 = vrot.lane.b32.xlu1 %v3420_v0, %s3175_s19  ;;  %1340 = vmax.xlane.f32.xlu0 %v1339_v14  ;;  %v1348_v0 = vsel %vm1325_vm7, %v3571_v21, -inf }
 0x3f0   : > { %v1321_v16 = vpop.f32.mrf.mxu0  ;;  %v3573_v22 = vadd.f32 %v1223_v15, %v931_v45 }
 0x3f1   : > { %v2866_v17 = vpop.f32.mrf.mxu1  ;;  %v3592_v29 = vadd.f32 %v1321_v16, %v931_v45 }
 0x3f2   : > { %v2881_v18 = vpop.f32.mrf.mxu0 }
 0x3f3   : > { %v1360_v32 = vsel %vm1332_vm8, %v3592_v29, -inf }
 0x404   : > { %v1328_v23 = vpop.xlane.xlu0 %1327 }
 0x405   : > { %1459 = vrot.lane.b32.xlu0 %v3398_v59, %s3175_s19  ;;  %v1351_v59 = vsel %vm1332_vm8, %v3573_v22, -inf }
 0x408   : > { %v1331_v27 = vpop.xlane.xlu0 %1330 }
 0x409   : > { %v1364_v31 = vsub.f32 %v3540_v43, %v1331_v27 }
 0x40b   : > { %v1377_v33 = vmul.f32 1.442695, %v1364_v31 }
 0x413   : > { %1343 = vmax.xlane.f32.xlu1 %v1342_v20 }
 0x424   : > { %1349 = vmax.xlane.f32.xlu0 %v1348_v0  ;;  %1761 = vrot.lane.b32.xlu1 %v3426_v3, %s3175_s19  ;;  %v1363_v3 = vsub.f32 %v3533_v38, %v1328_v23 }
 0x426   : > { %v1375_v30 = vmul.f32 1.442695, %v1363_v3 }
 0x428   : > { %1352 = vmax.xlane.f32.xlu0 %v1351_v59  ;;  %3070 = vpow2.f32 %v1375_v30 }
 0x429   : > { %3072 = vpow2.f32 %v1377_v33 }
 0x435   : > { %v3600_v36 = vpop.eup %3070 }
 0x436   : > { %v1399_v37 = vsel %vm1325_vm7, %v3600_v36, 0.0  ;;  %v3604_v38 = vpop.eup %3072 }
 0x437   : > { %v1402_v39 = vsel %vm1325_vm7, %v3604_v38, 0.0 }
 0x43e   : > { %1662 = vrot.lane.b32.xlu0 %v3424_v2, %s3175_s19  ;;  %v1357_v2 = vsel %vm1325_vm7, %v3587_v26, -inf }
 0x442   : > { %1660 = vrot.lane.b32.xlu0 %v3431_v5, %s3175_s19  ;;  %v1335_v5 = vpop.xlane.xlu0 %1334 }
 0x443   : > { %v1365_v34 = vsub.f32 %v3547_v48, %v1335_v5 }
 0x445   : > { %v1379_v35 = vmul.f32 1.442695, %v1365_v34 }
 0x447   : > { %3074 = vpow2.f32 %v1379_v35 }
 0x448   : > { %1355 = vmax.xlane.f32.xlu1 %v1354_v28 }
 0x44c   : > { %1358 = vmax.xlane.f32.xlu1 %v1357_v2 }
 0x450   : > { %1361 = vmax.xlane.f32.xlu1 %v1360_v32 }
 0x454   : > { %v3610_v40 = vpop.eup %3074 }
 0x455   : > { %v1405_v42 = vsel %vm1332_vm8, %v3610_v40, 0.0 }
 0x461   : > { %1400 = vadd.xlane.f32.xlu0 %v1399_v37  ;;  %1759 = vrot.lane.b32.xlu1 %v3433_v6, %s3175_s19 }
 0x465   : > { %1403 = vadd.xlane.f32.xlu0 %v1402_v39 }
 0x467   : > { %v1338_v41 = vpop.xlane.xlu1 %1337 }
 0x468   : > { %v1366_v44 = vsub.f32 %v3551_v52, %v1338_v41 }
 0x469   : > { %1406 = vadd.xlane.f32.xlu0 %v1405_v42 }
 0x46a   : > { %v1381_v45 = vmul.f32 1.442695, %v1366_v44 }
 0x46b   : > { %v1560_v43 = vpop.permute.xlu1 %1559 }
 0x46c   : > { %2902 = vmatpush3.msra.mxu0 %v1560_v43  ;;  %3076 = vpow2.f32 %v1381_v45 }
 0x46d   : > { %2927 = vmatprep.subr.mxu0 %v3169_v25 }
 0x474   : > { %v1347_v6 = vpop.xlane.xlu0 %1346 }
 0x475   : > { %v1369_v46 = vsub.f32 %v3555_v61, %v1347_v6 }
 0x477   : > { %v1387_v47 = vmul.f32 1.442695, %v1369_v46 }
 0x478   : > { %v1341_v48 = vpop.xlane.xlu0 %1340 }
 0x479   : > { %3078 = vpow2.f32 %v1387_v47  ;;  %v1367_v49 = vsub.f32 %v3557_v1, %v1341_v48  ;;  %v3619_v52 = vpop.eup %3076 }
 0x47a   : > { %v1408_v53 = vsel %vm1325_vm7, %v3619_v52, 0.0 }
 0x47b   : > { %v1383_v50 = vmul.f32 1.442695, %v1367_v49 }
 0x47c   : > { %v1460_v51 = vpop.permute.xlu0 %1459 }
 0x47d   : > { %3080 = vpow2.f32 %v1383_v50  ;;  %2887 = vmatpush3.msra.mxu1 %v1460_v51 }
 0x47e   : > { %2912 = vmatprep.subr.mxu1 %v3169_v25 }
 0x485   : > { %1409 = vadd.xlane.f32.xlu1 %v1408_v53 }
 0x486   : > { %v3623_v54 = vpop.eup %3078 }
 0x487   : > { %v1417_v55 = vsel %vm1325_vm7, %v3623_v54, 0.0 }
 0x488   : > { %1418 = vadd.xlane.f32.xlu0 %v1417_v55 }
 0x48a   : > { %v3627_v56 = vpop.eup %3080 }
 0x48b   : > { %v1411_v57 = vsel %vm1325_vm7, %v3627_v56, 0.0 }
 0x48c   : > { %1412 = vadd.xlane.f32.xlu1 %v1411_v57 }
 0x49c   : > { %v1344_v58 = vpop.xlane.xlu1 %1343 }
 0x49d   : > { %v1368_v60 = vsub.f32 %v3567_v19, %v1344_v58 }
 0x49f   : > { %v1385_v61 = vmul.f32 1.442695, %v1368_v60 }
 0x4a0   : > { %v1762_v17 = vpop.permute.xlu1 %1761 }
 0x4a1   : > { %3082 = vpow2.f32 %v1385_v61 }
 0x4ad   : > { %v1350_v62 = vpop.xlane.xlu0 %1349 }
 0x4ae   : > { %v3632_v63 = vpop.eup %3082  ;;  %v1370_v1 = vsub.f32 %v3571_v21, %v1350_v62 }
 0x4af   : > { %v1414_v4 = vsel %vm1332_vm8, %v3632_v63, 0.0 }
 0x4b0   : > { %v1389_v9 = vmul.f32 1.442695, %v1370_v1  ;;  %1415 = vadd.xlane.f32.xlu1 %v1414_v4 }
 0x4b1   : > { %v1353_v10 = vpop.xlane.xlu0 %1352 }
 0x4b2   : > { %3084 = vpow2.f32 %v1389_v9  ;;  %v1371_v11 = vsub.f32 %v3573_v22, %v1353_v10 }
 0x4b4   : > { %v1391_v12 = vmul.f32 1.442695, %v1371_v11 }
 0x4b5   : > { %v1663_v28 = vpop.permute.xlu0 %1662 }
 0x4b6   : > { %3086 = vpow2.f32 %v1391_v12 }
 0x4b9   : > { %v1661_v2 = vpop.permute.xlu0 %1660 }
 0x4bf   : > { %v3638_v13 = vpop.eup %3084 }
 0x4c0   : > { %v1420_v14 = vsel %vm1325_vm7, %v3638_v13, 0.0 }
 0x4c1   : > { %1421 = vadd.xlane.f32.xlu0 %v1420_v14 }
 0x4c3   : > { %v3642_v15 = vpop.eup %3086 }
 0x4c4   : > { %v1423_v16 = vsel %vm1332_vm8, %v3642_v15, 0.0 }
 0x4c5   : > { %1424 = vadd.xlane.f32.xlu0 %v1423_v16 }
 0x4d1   : > { %v1356_v18 = vpop.xlane.xlu1 %1355 }
 0x4d2   : > { %v1372_v19 = vsub.f32 %v3585_v24, %v1356_v18 }
 0x4d4   : > { %v1393_v20 = vmul.f32 1.442695, %v1372_v19 }
 0x4d5   : > { %v1359_v21 = vpop.xlane.xlu1 %1358 }
 0x4d6   : > { %3088 = vpow2.f32 %v1393_v20  ;;  %v1373_v22 = vsub.f32 %v3587_v26, %v1359_v21 }
 0x4d8   : > { %v1395_v0 = vmul.f32 1.442695, %v1373_v22 }
 0x4d9   : > { %v1362_v59 = vpop.xlane.xlu1 %1361 }
 0x4da   : > { %3090 = vpow2.f32 %v1395_v0  ;;  %v1374_v23 = vsub.f32 %v3592_v29, %v1362_v59  ;;  %v1906_v0 = vld [vmem:[%s3307_s14 + $0x18] sm:$0xff]  ;;  %v1905_v59 = vld [vmem:[%s3307_s14 + $0x10] sm:$0xff] }
 0x4db   : > { %1658 = vrot.lane.b32.xlu0 %v3438_v7, %s3175_s19 }
 0x4dc   : > { %v1397_v27 = vmul.f32 1.442695, %v1374_v23  ;;  %v1904_v23 = vld [vmem:[%s3307_s14 + $0x8] sm:$0xff] }
 0x4de   : > { %3092 = vpow2.f32 %v1397_v27 }
 0x4e3   : > { %v3651_v3 = vpop.eup %3088 }
 0x4e4   : > { %v1426_v24 = vsel %vm1325_vm7, %v3651_v3, 0.0 }
 0x4e5   : > { %1427 = vadd.xlane.f32.xlu1 %v1426_v24 }
 0x4e7   : > { %v3655_v30 = vpop.eup %3090 }
 0x4e8   : > { %v1429_v26 = vsel %vm1325_vm7, %v3655_v30, 0.0 }
 0x4e9   : > { %1430 = vadd.xlane.f32.xlu1 %v1429_v26  ;;  %v1903_v26 = vld [vmem:[%s3307_s14] sm:$0xff] }
 0x4ea   : > { %v1401_v29 = vpop.xlane.xlu0 %1400 }
 0x4eb   : > { %v3659_v31 = vpop.eup %3092  ;;  %3094 = vrcp.f32 %v1401_v29 }
 0x4ec   : > { %v1432_v7 = vsel %vm1332_vm8, %v3659_v31, 0.0 }
 0x4ed   : > { %1433 = vadd.xlane.f32.xlu1 %v1432_v7 }
 0x4ee   : > { %v1404_v5 = vpop.xlane.xlu0 %1403 }
 0x4ef   : > { %3096 = vrcp.f32 %v1404_v5 }
 0x4f2   : > { %v1407_v32 = vpop.xlane.xlu0 %1406 }
 0x4f3   : > { %3098 = vrcp.f32 %v1407_v32 }
 0x4f8   : > { %v3095_v33 = vpop.eup %3094 }
 0x4f9   : > { %v1447_v34 = vmul.f32 %v3095_v33, %v3600_v36 }
 0x4fb   : > { %2889 = vmatmul.mubr.msk.f32.vlgmr.msra.gmra.mxu1 %vm1325_vm7, %v1447_v34 }
 0x4fc   : > { %v3097_v35 = vpop.eup %3096  ;;  %2913 = vmatpush3.msk.msra.mxu1 %vm1476_vm6, %v1663_v28  ;;  %2891 = vmatprep.mubr.msk.f32.mxu1 %vm3170_vm4, %v3169_v25 }
 0x4fd   : > { %2914 = vmatprep.subr.mxu1 %v3169_v25  ;;  %v1448_v37 = vmul.f32 %v3097_v35, %v3604_v38  ;;  %v1760_v38 = vpop.permute.xlu1 %1759 }
 0x4fe   : > { %2915 = vmatpush3.msra.mxu1 %v1661_v2  ;;  %1757 = vrot.lane.b32.xlu1 %v3444_v8, %s3175_s19  ;;  %s3928_s19 = scalar_lea.vmem %s3896_s6, %s3284_s26 }
 0x4ff   : > { %2892 = vmatmul.mubr.msk.f32.gmra.mxu1 %vm1325_vm7, %v1448_v37  ;;  %2916 = vmatprep.subr.mxu1 %v3169_v25 }
 0x500   : > { %v3099_v36 = vpop.eup %3098  ;;  %2894 = vmatprep.mubr.msk.f32.mxu1 %vm3170_vm4, %v3169_v25 }
 0x501   : > { %v1449_v39 = vmul.f32 %v3099_v36, %v3610_v40 }
 0x503   : > { %2895 = vmatmul.mubr.msk.f32.gmra.mxu1 %vm1325_vm7, %v1449_v39 }
 0x504   : > { %2918 = vmatprep.mubr.msk.f32.mxu1 %vm3170_vm4, %v3169_v25 }
 0x50e   : > { %v1410_v41 = vpop.xlane.xlu1 %1409 }
 0x50f   : > { %3100 = vrcp.f32 %v1410_v41 }
 0x511   : > { %v1419_v6 = vpop.xlane.xlu0 %1418 }
 0x515   : > { %v1413_v42 = vpop.xlane.xlu1 %1412 }
 0x516   : > { %3102 = vrcp.f32 %v1413_v42 }
 0x51c   : > { %v3101_v8 = vpop.eup %3100 }
 0x51d   : > { %v1450_v43 = vmul.f32 %v3101_v8, %v3619_v52 }
 0x51f   : > { %2904 = vmatmul.mubr.msk.f32.vlgmr.msra.gmra.mxu0 %vm1325_vm7, %v1450_v43 }
 0x520   : > { %2928 = vmatpush3.msk.msra.mxu0 %vm1476_vm6, %v1762_v17  ;;  %2906 = vmatprep.mubr.msk.f32.mxu0 %vm3170_vm4, %v3169_v25 }
 0x521   : > { %2929 = vmatprep.subr.mxu0 %v3169_v25 }
 0x522   : > { %2930 = vmatpush3.msra.mxu0 %v1760_v38 }
 0x523   : > { %v3103_v40 = vpop.eup %3102  ;;  %2931 = vmatprep.subr.mxu0 %v3169_v25 }
 0x524   : > { %v1451_v44 = vmul.f32 %v3103_v40, %v3627_v56 }
 0x526   : > { %2907 = vmatmul.mubr.msk.f32.gmra.mxu0 %vm1325_vm7, %v1451_v44 }
 0x527   : > { %2909 = vmatprep.mubr.msk.f32.mxu0 %vm3170_vm4, %v3169_v25 }
 0x539   : > { %v1416_v45 = vpop.xlane.xlu1 %1415 }
 0x53a   : > { %3104 = vrcp.f32 %v1416_v45 }
 0x53b   : > { %3106 = vrcp.f32 %v1419_v6 }
 0x547   : > { %v3105_v46 = vpop.eup %3104 }
 0x548   : > { %v1452_v47 = vmul.f32 %v3105_v46, %v3632_v63  ;;  %v3107_v50 = vpop.eup %3106 }
 0x549   : > { %v1453_v51 = vmul.f32 %v3107_v50, %v3623_v54  ;;  %v2684_v50 = vld [vmem:[%s3928_s19] ss:$0 sm:$0xff] }
 0x54a   : > { %v1422_v48 = vpop.xlane.xlu0 %1421  ;;  %2910 = vmatmul.mubr.msk.f32.gmra.mxu0 %vm1325_vm7, %v1452_v47 }
 0x54b   : > { %3108 = vrcp.f32 %v1422_v48  ;;  %2933 = vmatprep.mubr.msk.f32.mxu0 %vm3170_vm4, %v3169_v25 }
 0x54e   : > { %v1425_v49 = vpop.xlane.xlu0 %1424 }
 0x54f   : > { %3110 = vrcp.f32 %v1425_v49 }
 0x552   : > { %v1659_v52 = vpop.permute.xlu0 %1658 }
 0x553   : > { %2917 = vmatpush3.msra.mxu1 %v1659_v52 }
 0x554   : > { %2919 = vmatmul.mubr.msk.f32.vlgmr.msra.gmra.mxu1 %vm1325_vm7, %v1453_v51  ;;  %2942 = vmatprep.subr.mxu1 %v3169_v25 }
 0x555   : > { %2921 = vmatprep.mubr.msk.f32.mxu1 %vm3170_vm4, %v3169_v25  ;;  %2943 = vmatpush3.msra.mxu1 %v1906_v0 }
 0x556   : > { %2944 = vmatprep.subr.mxu1 %v3169_v25 }
 0x557   : > { %2945 = vmatpush3.msra.mxu1 %v1905_v59 }
 0x558   : > { %v3109_v53 = vpop.eup %3108  ;;  %2946 = vmatprep.subr.mxu1 %v3169_v25 }
 0x559   : > { %v1454_v55 = vmul.f32 %v3109_v53, %v3638_v13  ;;  %2947 = vmatpush3.msra.mxu1 %v1904_v23 }
 0x55a   : > { %2948 = vmatprep.subr.mxu1 %v3169_v25 }
 0x55b   : > { %2922 = vmatmul.mubr.msk.f32.gmra.mxu1 %vm1325_vm7, %v1454_v55  ;;  %v3130_v55 = vld [vmem:[#allocation2] sm:$0xff] }
 0x55c   : > { %v3111_v56 = vpop.eup %3110  ;;  %2924 = vmatprep.mubr.msk.f32.mxu1 %vm3170_vm4, %v3169_v25  ;;  %2949 = vmatpush3.msra.mxu1 %v1903_v26 }
 0x55d   : > { %v1455_v54 = vmul.f32 %v3111_v56, %v3642_v15  ;;  %2976 = vmatprep.subr.mxu1 %v3169_v25 }
 0x55f   : > { %2925 = vmatmul.mubr.msk.f32.gmra.mxu1 %vm1325_vm7, %v1455_v54 }
 0x560   : > { %2950 = vmatprep.mubr.msk.f32.mxu1 %vm3170_vm4, %v3169_v25 }
 0x56e   : > { %v1428_v57 = vpop.xlane.xlu1 %1427 }
 0x56f   : > { %3112 = vrcp.f32 %v1428_v57 }
 0x572   : > { %v1431_v58 = vpop.xlane.xlu1 %1430 }
 0x573   : > { %3114 = vrcp.f32 %v1431_v58 }
 0x576   : > { %v1434_v60 = vpop.xlane.xlu1 %1433 }
 0x577   : > { %3116 = vrcp.f32 %v1434_v60 }
 0x57a   : > { %v1758_v61 = vpop.permute.xlu1 %1757 }
 0x57b   : > { %2932 = vmatpush3.msra.mxu0 %v1758_v61  ;;  %v3131_v61 = vld [vmem:[#allocation2 + $0x8] sm:$0xff] }
 0x57c   : > { %v3113_v62 = vpop.eup %3112  ;;  %2959 = vmatprep.subr.mxu0 %v3169_v25 }
 0x57d   : > { %v1456_v63 = vmul.f32 %v3113_v62, %v3651_v3 }
 0x57f   : > { %2934 = vmatmul.mubr.msk.f32.vlgmr.msra.gmra.mxu0 %vm1325_vm7, %v1456_v63 }
 0x580   : > { %v3115_v1 = vpop.eup %3114  ;;  %2936 = vmatprep.mubr.msk.f32.mxu0 %vm3170_vm4, %v3169_v25 }
 0x581   : > { %v1457_v4 = vmul.f32 %v3115_v1, %v3655_v30 }
 0x583   : > { %2937 = vmatmul.mubr.msk.f32.gmra.mxu0 %vm1325_vm7, %v1457_v4 }
 0x584   : > { %v3117_v9 = vpop.eup %3116  ;;  %2939 = vmatprep.mubr.msk.f32.mxu0 %vm3170_vm4, %v3169_v25 }
 0x585   : > { %v1458_v10 = vmul.f32 %v3117_v9, %v3659_v31 }
 0x587   : > { %2940 = vmatmul.mubr.msk.f32.gmra.mxu0 %vm1325_vm7, %v1458_v10  ;;  %v3132_v10 = vld [vmem:[#allocation2 + $0x10] sm:$0x3] }
 0x588   : > { %2967 = vmatprep.mubr.msk.f32.mxu0 %vm3170_vm4, %v3169_v25 }
 0x5bb   : > { %v1545_v11 = vpop.f32.mrf.mxu1 }
 0x5bd   : > { %v2890_v12 = vpop.f32.mrf.mxu1 }
 0x5bf   : > { %v1550_v13 = vpop.f32.mrf.mxu1 }
 0x5c1   : > { %v2893_v14 = vpop.f32.mrf.mxu1 }
 0x5c3   : > { %v3721_v15 = vpop.f32.mrf.mxu1 }
 0x5c5   : > { %v2896_v16 = vpop.f32.mrf.mxu1 }
 0x5df   : > { %v1644_v17 = vpop.f32.mrf.mxu0 }
 0x5e0   : > { %1859 = vrot.lane.b32.xlu0 %v1644_v17, %s3176_s0 }
 0x5e1   : > { %v2905_v18 = vpop.f32.mrf.mxu0 }
 0x5e6   : > { %v1649_v19 = vpop.f32.mrf.mxu0 }
 0x5e8   : > { %v2908_v20 = vpop.f32.mrf.mxu0 }
 0x60a   : > { %v1654_v21 = vpop.f32.mrf.mxu0 }
 0x60c   : > { %v2911_v22 = vpop.f32.mrf.mxu0 }
 0x614   : > { %v1743_v27 = vpop.f32.mrf.mxu1 }
 0x615   : > { %1871 = vrot.lane.b32.xlu1 %v1743_v27, %s3177_s13 }
 0x616   : > { %v2920_v28 = vpop.f32.mrf.mxu1 }
 0x619   : > { %1861 = vrot.lane.b32.xlu1 %v1649_v19, %s3176_s0 }
 0x61b   : > { %v1748_v3 = vpop.f32.mrf.mxu1 }
 0x61c   : > { %1873 = vrot.lane.b32.xlu0 %v1748_v3, %s3177_s13  ;;  %v2068_v3 = vld [vmem:[%s3324_s3 + $0x18] sm:$0xff] }
 0x61d   : > { %v2923_v24 = vpop.f32.mrf.mxu1  ;;  %2960 = vmatpush3.msra.mxu0 %v2068_v3 }
 0x61e   : > { %2961 = vmatprep.subr.mxu0 %v3169_v25  ;;  %v2067_v24 = vld [vmem:[%s3324_s3 + $0x10] sm:$0xff] }
 0x61f   : > { %v1753_v2 = vpop.f32.mrf.mxu1  ;;  %2962 = vmatpush3.msra.mxu0 %v2067_v24 }
 0x620   : > { %2963 = vmatprep.subr.mxu0 %v3169_v25 }
 0x621   : > { %v2926_v30 = vpop.f32.mrf.mxu1 }
 0x622   : > { %v2065_v30 = vld [vmem:[%s3324_s3] sm:$0xff] }
 0x63f   : > { %v1842_v29 = vpop.f32.mrf.mxu0 }
 0x640   : > { %1883 = vrot.lane.b32.xlu0 %v1842_v29, %s3178_s28 }
 0x641   : > { %v2935_v31 = vpop.f32.mrf.mxu0 }
 0x643   : > { %v1847_v7 = vpop.f32.mrf.mxu0 }
 0x644   : > { %1863 = vrot.lane.b32.xlu0 %v1654_v21, %s3176_s0  ;;  %1885 = vrot.lane.b32.xlu1 %v1847_v7, %s3178_s28 }
 0x645   : > { %v2938_v5 = vpop.f32.mrf.mxu0 }
 0x647   : > { %v1852_v32 = vpop.f32.mrf.mxu0 }
 0x648   : > { %1875 = vrot.lane.b32.xlu1 %v1753_v2, %s3177_s13  ;;  %1887 = vrot.lane.b32.xlu0 %v1852_v32, %s3178_s28  ;;  %v2066_v2 = vld [vmem:[%s3324_s3 + $0x8] sm:$0xff]  ;;  %s3930_s28 = sld [smem:[#allocation13_spill]] (!%p2695_p5) }
 0x649   : > { %v2941_v33 = vpop.f32.mrf.mxu0  ;;  %2964 = vmatpush3.msra.mxu0 %v2066_v2 }
 0x64a   : > { %2965 = vmatprep.subr.mxu0 %v3169_v25 }
 0x64b   : > { %2966 = vmatpush3.msra.mxu0 %v2065_v30 }
 0x652   : > { %v1860_v34 = vpop.permute.xlu0 %1859 }
 0x653   : > { %v1892_v36 = vsel %vm938_vm5, %v1545_v11, %v1860_v34 }
 0x687   : > { %v1872_v35 = vpop.permute.xlu1 %1871 }
 0x688   : > { %v1896_v39 = vsel %vm1895_vm9, %v1892_v36, %v1872_v35  ;;  %v2688_v36 = vld [vmem:[%s687_s16] ss:$0 sm:$0xff] }
 0x68b   : > { %v1862_v38 = vpop.permute.xlu1 %1861 }
 0x68c   : > { %v1893_v8 = vsel %vm938_vm5, %v1550_v13, %v1862_v38  ;;  %v2689_v38 = vld [vmem:[%s690_s22] ss:$0 sm:$0xff] }
 0x68e   : > { %v1874_v37 = vpop.permute.xlu0 %1873 }
 0x68f   : > { %v1897_v43 = vsel %vm1895_vm9, %v1893_v8, %v1874_v37 }
 0x6b2   : > { %v1884_v41 = vpop.permute.xlu0 %1883 }
 0x6b3   : > { %v1900_v42 = vsel %vm1899_vm10, %v1896_v39, %v1884_v41 }
 0x6b4   : > { %2951 = vmatmul.mubr.msk.f32.vlgmr.msra.gmra.mxu1 %vm722_vm2, %v1900_v42 }
 0x6b5   : > { %2953 = vmatprep.mubr.msk.f32.mxu1 %vm3170_vm4, %v3169_v25 }
 0x6b6   : > { %v1864_v40 = vpop.permute.xlu0 %1863  ;;  %v1886_v44 = vpop.permute.xlu1 %1885 }
 0x6b7   : > { %v1901_v45 = vsel %vm1899_vm10, %v1897_v43, %v1886_v44  ;;  %v1894_v6 = vsel %vm938_vm5, %v3721_v15, %v1864_v40 }
 0x6b8   : > { %2954 = vmatmul.mubr.msk.f32.gmra.mxu1 %vm722_vm2, %v1901_v45 }
 0x6b9   : > { %2956 = vmatprep.mubr.msk.f32.mxu1 %vm3170_vm4, %v3169_v25 }
 0x6ba   : > { %v1876_v46 = vpop.permute.xlu1 %1875  ;;  %v1888_v47 = vpop.permute.xlu0 %1887 }
 0x6bb   : > { %v1898_v48 = vsel %vm1895_vm9, %v1894_v6, %v1876_v46 }
 0x6bc   : > { %v1902_v49 = vsel %vm1899_vm10, %v1898_v48, %v1888_v47  ;;  %v2207_v48 = vld [vmem:[%s3334_s30 + $0x78] sm:$0xff] }
 0x6bd   : > { %2957 = vmatmul.mubr.msk.f32.gmra.mxu1 %vm722_vm2, %v1902_v49  ;;  %v2206_v49 = vld [vmem:[%s3334_s30 + $0x70] sm:$0xff] }
 0x6be   : > { %3008 = vmatprep.mubr.msk.f32.mxu1 %vm3170_vm4, %v3169_v25  ;;  %2977 = vmatpush3.msra.mxu1 %v2207_v48 }
 0x6bf   : > { %2978 = vmatprep.subr.mxu1 %v3169_v25 }
 0x6c0   : > { %2979 = vmatpush3.msra.mxu1 %v2206_v49 }
 0x6c1   : > { %2980 = vmatprep.subr.mxu1 %v3169_v25 }
 0x774   : > { %v1989_v51 = vpop.f32.mrf.mxu1 }
 0x775   : > { %v1990_v52 = vadd.f32 %v2684_v50, %v1989_v51  ;;  %v2204_v51 = vld [vmem:[%s3334_s30 + $0x60] sm:$0xff] }
 0x776   : > { %v2952_v53 = vpop.f32.mrf.mxu1 }
 0x777   : > { %v3758_v56 = vadd.f32 %v3130_v55, %v1990_v52  ;;  %v2203_v52 = vld [vmem:[%s3334_s30 + $0x58] sm:$0xff]  ;;  %v2202_v53 = vld [vmem:[%s3334_s30 + $0x50] sm:$0xff]  ;;  %v2201_v55 = vld [vmem:[%s3334_s30 + $0x48] sm:$0xff] }
 0x778   : > { %v1994_v54 = vpop.f32.mrf.mxu1 }
 0x779   : > { %v1995_v57 = vadd.f32 %v2684_v50, %v1994_v54  ;;  %v2006_v58 = vsel %vm722_vm2, %v3758_v56, 0.0  ;;  %v2200_v54 = vld [vmem:[%s3334_s30 + $0x40] sm:$0xff] }
 0x77a   : > { %2007 = vadd.xlane.f32.xlu1 %v2006_v58  ;;  %v2955_v60 = vpop.f32.mrf.mxu1  ;;  %v2198_v58 = vld [vmem:[%s3334_s30 + $0x30] sm:$0xff] }
 0x77b   : > { %v3762_v62 = vadd.f32 %v3131_v61, %v1995_v57  ;;  %v2199_v57 = vld [vmem:[%s3334_s30 + $0x38] sm:$0xff]  ;;  %v2197_v60 = vld [vmem:[%s3334_s30 + $0x28] sm:$0xff]  ;;  %v2196_v61 = vld [vmem:[%s3334_s30 + $0x20] sm:$0xff] }
 0x77d   : > { %v1999_v63 = vpop.f32.mrf.mxu1  ;;  %v2009_v1 = vsel %vm722_vm2, %v3762_v62, 0.0 }
 0x77e   : > { %v2000_v4 = vadd.f32 %v2684_v50, %v1999_v63  ;;  %2010 = vadd.xlane.f32.xlu0 %v2009_v1  ;;  %v2205_v50 = vld [vmem:[%s3334_s30 + $0x68] sm:$0xff]  ;;  %v2195_v63 = vld [vmem:[%s3334_s30 + $0x18] sm:$0xff]  ;;  %v2194_v1 = vld [vmem:[%s3334_s30 + $0x10] sm:$0xff] }
 0x77f   : > { %v2958_v9 = vpop.f32.mrf.mxu1  ;;  %2981 = vmatpush3.msra.mxu1 %v2205_v50 }
 0x780   : > { %v3766_v11 = vadd.f32 %v3132_v10, %v2000_v4  ;;  %2982 = vmatprep.subr.mxu1 %v3169_v25  ;;  %v2193_v4 = vld [vmem:[%s3334_s30 + $0x8] sm:$0xff]  ;;  %v2192_v9 = vld [vmem:[%s3334_s30] sm:$0xff] }
 0x781   : > { %2983 = vmatpush3.msra.mxu1 %v2204_v51  ;;  %v2690_v10 = vld [vmem:[%s698_s5] ss:$0 sm:$0xff] }
 0x782   : > { %v2012_v12 = vsel %vm729_vm3, %v3766_v11, 0.0  ;;  %2984 = vmatprep.subr.mxu1 %v3169_v25 }
 0x783   : > { %2013 = vadd.xlane.f32.xlu0 %v2012_v12  ;;  %2985 = vmatpush3.msra.mxu1 %v2203_v52 }
 0x784   : > { %2986 = vmatprep.subr.mxu1 %v3169_v25 }
 0x785   : > { %2987 = vmatpush3.msra.mxu1 %v2202_v53 }
 0x786   : > { %2988 = vmatprep.subr.mxu1 %v3169_v25 }
 0x787   : > { %2989 = vmatpush3.msra.mxu1 %v2201_v55 }
 0x788   : > { %2990 = vmatprep.subr.mxu1 %v3169_v25 }
 0x789   : > { %2991 = vmatpush3.msra.mxu1 %v2200_v54 }
 0x78a   : > { %2992 = vmatprep.subr.mxu1 %v3169_v25 }
 0x78b   : > { %2993 = vmatpush3.msra.mxu1 %v2199_v57 }
 0x78c   : > { %2994 = vmatprep.subr.mxu1 %v3169_v25 }
 0x78d   : > { %2995 = vmatpush3.msra.mxu1 %v2198_v58 }
 0x78e   : > { %2996 = vmatprep.subr.mxu1 %v3169_v25 }
 0x78f   : > { %2997 = vmatpush3.msra.mxu1 %v2197_v60 }
 0x790   : > { %2998 = vmatprep.subr.mxu1 %v3169_v25 }
 0x791   : > { %2999 = vmatpush3.msra.mxu1 %v2196_v61 }
 0x792   : > { %3000 = vmatprep.subr.mxu1 %v3169_v25 }
 0x793   : > { %3001 = vmatpush3.msra.mxu1 %v2195_v63 }
 0x794   : > { %3002 = vmatprep.subr.mxu1 %v3169_v25 }
 0x795   : > { %3003 = vmatpush3.msra.mxu1 %v2194_v1 }
 0x796   : > { %3004 = vmatprep.subr.mxu1 %v3169_v25 }
 0x797   : > { %3005 = vmatpush3.msra.mxu1 %v2193_v4 }
 0x798   : > { %3006 = vmatprep.subr.mxu1 %v3169_v25 }
 0x799   : > { %3007 = vmatpush3.msra.mxu1 %v2192_v9 }
 0x803   : > { %v2008_v13 = vpop.xlane.xlu1 %2007 }
 0x804   : > { %v2015_v14 = vmul.f32 0.03125, %v2008_v13 }
 0x806   : > { %v2018_v15 = vsub.f32 %v3758_v56, %v2015_v14 }
 0x807   : > { %v2011_v16 = vpop.xlane.xlu0 %2010 }
 0x808   : > { %v2016_v17 = vmul.f32 0.03125, %v2011_v16  ;;  %v2021_v18 = vmul.f32 %v2018_v15, %v2018_v15 }
 0x80a   : > { %v2019_v19 = vsub.f32 %v3762_v62, %v2016_v17  ;;  %v2024_v20 = vsel %vm722_vm2, %v2021_v18, 0.0 }
 0x80b   : > { %2025 = vadd.xlane.f32.xlu0 %v2024_v20 }
 0x80c   : > { %v2014_v21 = vpop.xlane.xlu0 %2013  ;;  %v2022_v22 = vmul.f32 %v2019_v19, %v2019_v19 }
 0x80d   : > { %v2017_v0 = vmul.f32 0.03125, %v2014_v21 }
 0x80e   : > { %v2027_v59 = vsel %vm722_vm2, %v2022_v22, 0.0 }
 0x80f   : > { %v2020_v23 = vsub.f32 %v3766_v11, %v2017_v0  ;;  %2028 = vadd.xlane.f32.xlu1 %v2027_v59 }
 0x811   : > { %v2023_v27 = vmul.f32 %v2020_v23, %v2020_v23 }
 0x813   : > { %v2030_v28 = vsel %vm729_vm3, %v2023_v27, 0.0 }
 0x814   : > { %2031 = vadd.xlane.f32.xlu0 %v2030_v28 }
 0x894   : > { %v2026_v26 = vpop.xlane.xlu0 %2025 }
 0x895   : > { %v2033_v29 = vmul.f32 0.03125, %v2026_v26 }
 0x897   : > { %v2036_v31 = vadd.f32 1e-05, %v2033_v29 }
 0x898   : > { %v2029_v7 = vpop.xlane.xlu1 %2028 }
 0x899   : > { %3118 = vrsqrt.f32 %v2036_v31  ;;  %v2034_v5 = vmul.f32 0.03125, %v2029_v7 }
 0x89b   : > { %v2037_v32 = vadd.f32 1e-05, %v2034_v5 }
 0x89d   : > { %3120 = vrsqrt.f32 %v2037_v32  ;;  %v2032_v33 = vpop.xlane.xlu0 %2031 }
 0x89e   : > { %v2035_v34 = vmul.f32 0.03125, %v2032_v33 }
 0x8a0   : > { %v2038_v35 = vadd.f32 1e-05, %v2035_v34 }
 0x8a2   : > { %3122 = vrsqrt.f32 %v2038_v35 }
 0x8a6   : > { %v3119_v37 = vpop.eup %3118 }
 0x8a7   : > { %v2042_v39 = vmul.f32 %v3119_v37, %v2018_v15 }
 0x8a9   : > { %v2052_v41 = vmul.f32 %v2688_v36, %v2042_v39 }
 0x8aa   : > { %v3121_v42 = vpop.eup %3120 }
 0x8ab   : > { %v2062_v8 = vadd.f32 %v2689_v38, %v2052_v41  ;;  %v2043_v43 = vmul.f32 %v3121_v42, %v2019_v19 }
 0x8ad   : > { %2968 = vmatmul.mubr.msk.f32.vlgmr.msra.gmra.mxu0 %vm722_vm2, %v2062_v8  ;;  %v2053_v40 = vmul.f32 %v2688_v36, %v2043_v43 }
 0x8ae   : > { %2970 = vmatprep.mubr.msk.f32.mxu0 %vm3170_vm4, %v3169_v25 }
 0x8af   : > { %v3123_v44 = vpop.eup %3122  ;;  %v2063_v45 = vadd.f32 %v2689_v38, %v2053_v40  ;;  %v2694_v40 = vld [vmem:[%s706_s20] ss:$0 sm:$0xff] }
 0x8b0   : > { %v2044_v6 = vmul.f32 %v3123_v44, %v2020_v23 }
 0x8b1   : > { %2971 = vmatmul.mubr.msk.f32.gmra.mxu0 %vm722_vm2, %v2063_v45 }
 0x8b2   : > { %2973 = vmatprep.mubr.msk.f32.mxu0 %vm3170_vm4, %v3169_v25  ;;  %v2054_v46 = vmul.f32 %v2688_v36, %v2044_v6 }
 0x8b4   : > { %v2064_v47 = vadd.f32 %v2689_v38, %v2054_v46 }
 0x8b6   : > { %2974 = vmatmul.mubr.msk.f32.gmra.mxu0 %vm722_vm2, %v2064_v47 }
 0x96d   : > { %v2151_v12 = vpop.f32.mrf.mxu0 }
 0x96e   : > { %v2152_v13 = vadd.f32 %v2690_v10, %v2151_v12 }
 0x96f   : > { %v2969_v14 = vpop.f32.mrf.mxu0 }
 0x970   : > { %v2165_v15 = vmul.f32 %v2152_v13, %v2152_v13 }
 0x971   : > { %v2156_v16 = vpop.f32.mrf.mxu0 }
 0x972   : > { %v2168_v17 = vmul.f32 %v2165_v15, %v2152_v13  ;;  %v2157_v18 = vadd.f32 %v2690_v10, %v2156_v16 }
 0x973   : > { %v2972_v19 = vpop.f32.mrf.mxu0 }
 0x974   : > { %v2171_v20 = vmul.f32 0.044715, %v2168_v17  ;;  %v2166_v21 = vmul.f32 %v2157_v18, %v2157_v18 }
 0x976   : > { %v2174_v22 = vadd.f32 %v2171_v20, %v2152_v13  ;;  %v2169_v0 = vmul.f32 %v2166_v21, %v2157_v18  ;;  %v2161_v59 = vpop.f32.mrf.mxu0 }
 0x977   : > { %v2162_v23 = vadd.f32 %v2690_v10, %v2161_v59 }
 0x978   : > { %v2177_v27 = vmul.f32 0.7978846, %v2174_v22  ;;  %v2172_v28 = vmul.f32 0.044715, %v2169_v0  ;;  %v2975_v3 = vpop.f32.mrf.mxu0 }
 0x979   : > { %v2167_v24 = vmul.f32 %v2162_v23, %v2162_v23 }
 0x97a   : > { %3124 = vtanh.f32 %v2177_v27  ;;  %v2175_v2 = vadd.f32 %v2172_v28, %v2157_v18 }
 0x97b   : > { %v2170_v30 = vmul.f32 %v2167_v24, %v2162_v23 }
 0x97c   : > { %v2178_v26 = vmul.f32 0.7978846, %v2175_v2 }
 0x97d   : > { %v2173_v29 = vmul.f32 0.044715, %v2170_v30 }
 0x97e   : > { %3126 = vtanh.f32 %v2178_v26 }
 0x97f   : > { %v2176_v31 = vadd.f32 %v2173_v29, %v2162_v23 }
 0x981   : > { %v2179_v7 = vmul.f32 0.7978846, %v2176_v31 }
 0x983   : > { %3128 = vtanh.f32 %v2179_v7 }
 0x987   : > { %v3125_v5 = vpop.eup %3124 }
 0x988   : > { %v2183_v32 = vadd.f32 1.0, %v3125_v5 }
 0x98a   : > { %v2186_v33 = vmul.f32 0.5, %v2183_v32 }
 0x98b   : > { %v3127_v34 = vpop.eup %3126 }
 0x98c   : > { %v2189_v35 = vmul.f32 %v2186_v33, %v2152_v13  ;;  %v2184_v37 = vadd.f32 1.0, %v3127_v34 }
 0x98e   : > { %3009 = vmatmul.mubr.f32.vlgmr.msra.gmra.mxu1 %v2189_v35  ;;  %v2187_v36 = vmul.f32 0.5, %v2184_v37 }
 0x98f   : > { %3011 = vmatprep.mubr.msk.f32.mxu1 %vm3170_vm4, %v3169_v25 }
 0x990   : > { %v3129_v39 = vpop.eup %3128  ;;  %v2190_v38 = vmul.f32 %v2187_v36, %v2157_v18 }
 0x991   : > { %v2185_v41 = vadd.f32 1.0, %v3129_v39 }
 0x992   : > { %3012 = vmatmul.mubr.f32.gmra.mxu1 %v2190_v38 }
 0x993   : > { %3014 = vmatprep.mubr.msk.f32.mxu1 %vm3170_vm4, %v3169_v25  ;;  %v2188_v42 = vmul.f32 0.5, %v2185_v41 }
 0x995   : > { %v2191_v8 = vmul.f32 %v2188_v42, %v2162_v23 }
 0x997   : > { %3015 = vmatmul.mubr.f32.gmra.mxu1 %v2191_v8 }
 0xa4e   : > { %v2274_v43 = vpop.f32.mrf.mxu1 }
 0xa4f   : > { %v2288_v44 = vadd.f32 %v2274_v43, %v3758_v56 }
 0xa50   : > { %v3010_v45 = vpop.f32.mrf.mxu1 }
 0xa51   : > { %v2298_v6 = vadd.f32 %v2694_v40, %v2288_v44 }
 0xa52   : > { %v2279_v46 = vpop.f32.mrf.mxu1 }
 0xa53   : > { %2301 = vst.msk [vmem:[#allocation2] sm:$0xff] %vm722_vm2, %v2298_v6  ;;  %v2289_v47 = vadd.f32 %v2279_v46, %v3762_v62 }
 0xa54   : > { %v3013_v48 = vpop.f32.mrf.mxu1 }
 0xa55   : > { %v2299_v25 = vadd.f32 %v2694_v40, %v2289_v47 }
 0xa57   : > { %2302 = vst.msk [vmem:[#allocation2 + $0x8] sm:$0xff] %vm722_vm2, %v2299_v25  ;;  %v2284_v49 = vpop.f32.mrf.mxu1 }
 0xa58   : > { %v2290_v50 = vadd.f32 %v2284_v49, %v3766_v11  ;;  %2307 = sbr.rel (%p2695_p5) target bundleno = 3049 (0xbe9), region = 96 }
 0xa59   : > { %v3016_v51 = vpop.f32.mrf.mxu1 }
 0xa5a   : > { %v2300_v52 = vadd.f32 %v2694_v40, %v2290_v50 }
 0xa5c   : > { %2303 = vst.msk [vmem:[#allocation2 + $0x10] sm:$0x3] %vm729_vm3, %v2300_v52 }
 0xa5d   : > { %v2388_v56 = vld [vmem:[%s3929_s27 + $0x18] sm:$0xff]  ;;  %v3179_v53 = vmov 0.0   ;;  %vm3180_vm11 = vmmov 0   ;;  %v2387_v62 = vld [vmem:[%s3929_s27 + $0x10] sm:$0xff]  ;;  %v2308_v11 = vld [vmem:[%s3930_s28] sm:$0x3] }
 0xa5e   : > { %3017 = vmatprep.subr.mxu0 %v3179_v53  ;;  %3023 = vmatprep.mubr.msk.f32.mxu0 %vm3180_vm11, %v3179_v53  ;;  %v2386_v55 = vld [vmem:[%s3929_s27 + $0x8] sm:$0xff]  ;;  %v2385_v54 = vld [vmem:[%s3929_s27] sm:$0xff]  ;;  %vm2469_vm12 = vcmask 123904  }
 0xa5f   : > { %3018 = vmatpush3.msk.msra.mxu0 %vm1476_vm6, %v2300_v52  ;;  %3026 = vmatprep.subr.mxu1 %v3179_v53  ;;  %v2698_v60 = vld [vmem:[%s3931_s1] ss:$0 sm:$0xff] }
 0xa60   : > { %3019 = vmatprep.subr.mxu0 %v3179_v53  ;;  %3027 = vmatpush3.msra.mxu1 %v2388_v56 }
 0xa61   : > { %3020 = vmatpush3.msra.mxu0 %v2299_v25  ;;  %3028 = vmatprep.subr.mxu1 %v3179_v53 }
 0xa62   : > { %3021 = vmatprep.subr.mxu0 %v3179_v53  ;;  %3029 = vmatpush3.msra.mxu1 %v2387_v62 }
 0xa63   : > { %3022 = vmatpush3.msra.mxu0 %v2298_v6  ;;  %3030 = vmatprep.subr.mxu1 %v3179_v53 }
 0xa64   : > { %3024 = vmatmul.mubr.msk.f32.vlgmr.msra.gmra.mxu0 %vm1325_vm7, %v2308_v11  ;;  %3031 = vmatpush3.msra.mxu1 %v2386_v55 }
 0xa65   : > { %3032 = vmatprep.subr.mxu1 %v3179_v53  ;;  %3034 = vmatprep.mubr.msk.f32.mxu1 %vm3180_vm11, %v3179_v53 }
 0xa66   : > { %3033 = vmatpush3.msra.mxu1 %v2385_v54 }
 0xb24   : > { %v2381_v57 = vpop.f32.mrf.mxu0 }
 0xb25   : > { %3035 = vmatmul.mubr.msk.f32.vlgmr.msra.gmra.mxu1 %vm722_vm2, %v2381_v57 }
 0xb26   : > { %v3025_v58 = vpop.f32.mrf.mxu0 }
 0xbe5   : > { %v2465_v61 = vpop.f32.mrf.mxu1 }
 0xbe6   : > { %v2466_v63 = vadd.f32 %v2698_v60, %v2465_v61 }
 0xbe7   : > { %v3036_v1 = vpop.f32.mrf.mxu1 }
 0xbe8   : > { %2470 = vst.msk [vmem:[#allocation3] sm:$0x3] %vm2469_vm12, %v2466_v63 }
 0xbe9 PF: > { %p3041_p6 = scmp.eq.s32.totalorder %s3278_s25, 4  ;;  %s3181_s16 = smov [#allocation3]  }
 0xbea   : > { %s2478_s22 = sshll.u32 %s3181_s16, 4  ;;  %s2479_s22 = int_to_ptr.vmem [resolvable:$true] %s2478_s22 }
 0xbeb   : > { %s3133_s5 = scalar_lea.vmem %s2479_s22, 32  ;;  %p3140_p10 = scmp.lt.s32.totalorder %s2479_s22, %s2479_s22 }
 0xbec   : > { %p3134_p7 = scmp.ne.s32.totalorder %s2479_s22, %s3133_s5  ;;  %p3141_p11 = scmp.lt.s32.totalorder %s3133_s5, %s3133_s5 }
 0xbee   : > { %p3135_p8 = pnand %p3134_p7, %p3041_p6  ;;  %p3142_p12 = por %p3141_p11, %p3140_p10 }
 0xbf0   : > { %p3136_p9 = pneg %p3135_p8 }
 0xbf2   : > { %p3143_p13 = pnand %p3142_p12, %p3136_p9 }
 0xbf4   : > { %3146 = shalt.err (!%p3143_p13)
}
 0xbf5   : > { %s3932_s20 = sld [smem:[#allocation14_spill]] }
 0xbfb   : > { %3038 = dma.vmem_to_hbm [thread:$0]  (%p3041_p6), %s2479_s22, 32, %s3932_s20, [#allocation4]  }
 0xbfc   : > { %3162 = dma.done.wait (%p3041_p6), [#allocation4], 32  }
 0xbfd   : > { %3164 = vsyncadd (%p3041_p6), [#allocation4], 4294967264 }
 0xbfe PF: > { %s3933_s17 = sld [smem:[#allocation6_spill]] }
 0xc04   : > { %s28_s24 = sadd.s32 1, %s3933_s17  }
 0xc05   : > { %p25_p0 = scmp.ge.s32.totalorder %s28_s24, 7  }
 0xc07   :  { %27 = sbr.rel (!%p25_p0) target bundleno = 10 (0xa), region = 156 }
 0xc0c   :  { %2491 = vsyncpa [#allocation4], 1 }
 0xc0d   :  { %2493 = vsyncpa [#allocation4 + $0x1], 1 }

</bundles_post_ra>
